<compile_context>
chip_gen: v6e
topology: v6e:2x2x1
jax: 0.10.0
libtpu: 0.0.40
codegen_flags: <defaults>
</compile_context>

<pallas_src>
import jax
import jax.numpy as jnp
from jax.experimental import pallas as pl
from jax.experimental.pallas import tpu as pltpu  # noqa: F401  (TPU backend)

# ----------------------------- small config -----------------------------------
B, S = 2, 8          # batch, sequence length
HID = 32             # hidden size
NHEAD = 2            # attention heads
DH = HID // NHEAD    # head dim
INTER = 64           # FFN intermediate size
NLAYERS = 2          # encoder layers
VOCAB = 50           # vocabulary size
MAXPOS = 32          # position embedding table size
TYPEVOCAB = 2        # token-type embedding table size
NLABELS = 3          # RoBERTa sentiment classifier -> 3 logits
PAD_ID = 1           # RoBERTa padding idx
LN_EPS = 1e-5
OUT_LANES = 128      # lane-dense kernel output width (logical output is 1)


# ----------------------------- in-kernel helpers -------------------------------
def _layernorm(x, g, b):
    mu = jnp.mean(x, axis=-1, keepdims=True)
    xc = x - mu
    var = jnp.mean(xc * xc, axis=-1, keepdims=True)
    return xc * jax.lax.rsqrt(var + LN_EPS) * g + b


def _gelu_tanh(x):
    # TODO(synk): HF RoBERTa uses exact erf-GELU; tanh approximation used here
    # (erf is not guaranteed to lower in Mosaic).
    c = jnp.float32(0.7978845608028654)  # sqrt(2/pi)
    return 0.5 * x * (1.0 + jnp.tanh(c * (x + 0.044715 * x * x * x)))


# ----------------------------- fused forward kernel ----------------------------
def fused_forward_kernel(
    emb_ref, mask_ref,
    emb_ln_g_ref, emb_ln_b_ref,
    wqkv_ref, bqkv_ref, wo_ref, bo_ref, ln1_g_ref, ln1_b_ref,
    wi_ref, bi_ref, wf_ref, bf_ref, ln2_g_ref, ln2_b_ref,
    cls_w1_ref, cls_b1_ref, wz_ref, bz_ref,
    o_ref,
):
    scale = jnp.float32(1.0 / float(DH) ** 0.5)

    # Embedding LayerNorm (no zeros-residual add / extra DMA).
    x = _layernorm(emb_ref[...], emb_ln_g_ref[...], emb_ln_b_ref[...])   # (B*S, HID)

    # Additive attention bias built in-kernel from the (B, S) mask.
    bias = ((1.0 - mask_ref[...]) * jnp.float32(-1e9))[:, None, :]       # (B, 1, S)

    for l in range(NLAYERS):                         # static unroll (NLAYERS=2)
        # ---- fused QKV projection: one (HID, 3*HID) matmul ----
        qkv = jnp.dot(x, wqkv_ref[l], preferred_element_type=jnp.float32) + bqkv_ref[l]
        qkv = qkv.reshape(B, S, 3 * HID)

        # ---- attention: all batches & heads inside this single invocation ----
        ctx_heads = []
        for h in range(NHEAD):                       # static unroll, all in VMEM
            qh = qkv[:, :, h * DH:(h + 1) * DH]                       # (B, S, DH)
            kh = qkv[:, :, HID + h * DH:HID + (h + 1) * DH]
            vh = qkv[:, :, 2 * HID + h * DH:2 * HID + (h + 1) * DH]
            # contract last dims directly (no explicit k.T)
            s = jnp.einsum("bqd,bkd->bqk", qh, kh,
                           preferred_element_type=jnp.float32) * scale + bias
            m = jnp.max(s, axis=-1, keepdims=True)
            p = jnp.exp(s - m)
            denom = jnp.sum(p, axis=-1, keepdims=True)
            p = p * pl.reciprocal(denom, approx=True)        # EUP, not VPU divide
            ctx_heads.append(jnp.einsum("bqk,bkd->bqd", p, vh,
                                        preferred_element_type=jnp.float32))
        ctx = jnp.concatenate(ctx_heads, axis=-1).reshape(B * S, HID)

        # ---- attention output projection + Add&LN ----
        attn_out = jnp.dot(ctx, wo_ref[l], preferred_element_type=jnp.float32) + bo_ref[l]
        x = _layernorm(attn_out + x, ln1_g_ref[l], ln1_b_ref[l])

        # ---- FFN + Add&LN ----
        inter = _gelu_tanh(
            jnp.dot(x, wi_ref[l], preferred_element_type=jnp.float32) + bi_ref[l])
        ffn_out = jnp.dot(inter, wf_ref[l], preferred_element_type=jnp.float32) + bf_ref[l]
        x = _layernorm(ffn_out + x, ln2_g_ref[l], ln2_b_ref[l])

    # ---- classification head on the <s> (CLS) token of every example ----
    cls = jnp.concatenate([x[b * S:b * S + 1, :] for b in range(B)], axis=0)  # (B, HID)
    hcls = jnp.tanh(
        jnp.dot(cls, cls_w1_ref[...], preferred_element_type=jnp.float32) + cls_b1_ref[...])
    # out_proj (HID,3) @ l3 (3,1) pre-folded and lane-replicated to 128 columns:
    # lane-dense matmul + store, no 3-wide / 1-wide intermediates.
    z = jnp.dot(hcls, wz_ref[...], preferred_element_type=jnp.float32) + bz_ref[...]  # (B,128)
    # numerically stable sigmoid
    ez = jnp.exp(-jnp.abs(z))
    o_ref[...] = jnp.where(z >= 0.0, 1.0 / (1.0 + ez), ez / (1.0 + ez))


# ----------------------------- parameters --------------------------------------
def init_params(key):
    def nrm(key, shape, scale=0.02):
        return scale * jax.random.normal(key, shape, dtype=jnp.float32)

    keys = iter(jax.random.split(key, 16 + NLAYERS * 16))
    p = {
        "word_emb": nrm(next(keys), (VOCAB, HID)),
        "pos_emb": nrm(next(keys), (MAXPOS, HID)),
        "type_emb": nrm(next(keys), (TYPEVOCAB, HID)),
        "emb_ln_g": jnp.ones((HID,), jnp.float32),
        "emb_ln_b": jnp.zeros((HID,), jnp.float32),
        "cls_w1": nrm(next(keys), (HID, HID)),
        "cls_b1": jnp.zeros((HID,), jnp.float32),
        "cls_w2": nrm(next(keys), (HID, NLABELS)),
        "cls_b2": jnp.zeros((NLABELS,), jnp.float32),
        "l3_w": nrm(next(keys), (NLABELS, 1), scale=0.5),
        "l3_b": jnp.zeros((1,), jnp.float32),
        "layers": [],
    }
    for _ in range(NLAYERS):
        p["layers"].append({
            "wq": nrm(next(keys), (HID, HID)), "bq": jnp.zeros((HID,), jnp.float32),
            "wk": nrm(next(keys), (HID, HID)), "bk": jnp.zeros((HID,), jnp.float32),
            "wv": nrm(next(keys), (HID, HID)), "bv": jnp.zeros((HID,), jnp.float32),
            "wo": nrm(next(keys), (HID, HID)), "bo": jnp.zeros((HID,), jnp.float32),
            "ln1_g": jnp.ones((HID,), jnp.float32), "ln1_b": jnp.zeros((HID,), jnp.float32),
            "wi": nrm(next(keys), (HID, INTER)), "bi": jnp.zeros((INTER,), jnp.float32),
            "wf": nrm(next(keys), (INTER, HID)), "bf": jnp.zeros((HID,), jnp.float32),
            "ln2_g": jnp.ones((HID,), jnp.float32), "ln2_b": jnp.zeros((HID,), jnp.float32),
        })
    return p


def fuse_params(p):
    """Stack per-layer weights, fuse QKV, fold out_proj @ l3, reshape biases."""
    L = p["layers"]

    def stack2d(name):
        return jnp.stack([lp[name] for lp in L])

    def stack_row(name):
        return jnp.stack([lp[name][None, :] for lp in L])

    wz = p["cls_w2"] @ p["l3_w"]                                   # (HID, 1)
    bz = (p["cls_b2"] @ p["l3_w"] + p["l3_b"]).reshape(1, 1)       # (1, 1)
    return {
        "word_emb": p["word_emb"], "pos_emb": p["pos_emb"], "type_emb": p["type_emb"],
        "emb_ln_g": p["emb_ln_g"][None, :], "emb_ln_b": p["emb_ln_b"][None, :],
        "wqkv": jnp.stack([jnp.concatenate([lp["wq"], lp["wk"], lp["wv"]], axis=1)
                           for lp in L]),                          # (L, HID, 3*HID)
        "bqkv": jnp.stack([jnp.concatenate([lp["bq"], lp["bk"], lp["bv"]])[None, :]
                           for lp in L]),                          # (L, 1, 3*HID)
        "wo": stack2d("wo"), "bo": stack_row("bo"),
        "ln1_g": stack_row("ln1_g"), "ln1_b": stack_row("ln1_b"),
        "wi": stack2d("wi"), "bi": stack_row("bi"),
        "wf": stack2d("wf"), "bf": stack_row("bf"),
        "ln2_g": stack_row("ln2_g"), "ln2_b": stack_row("ln2_b"),
        "cls_w1": p["cls_w1"], "cls_b1": p["cls_b1"][None, :],
        "wz": jnp.tile(wz, (1, OUT_LANES)),                        # lane-dense (HID, 128)
        "bz": jnp.tile(bz, (1, OUT_LANES)),                        # (1, 128)
    }


# ----------------------------- forward ------------------------------------------
@jax.jit
def roberta_twitter_forward(ids, mask, token_type_ids, fp):
    # RoBERTa position ids + embedding gathers stay in plain JAX (gather).
    not_pad = (ids != PAD_ID).astype(jnp.int32)
    pos_ids = jnp.cumsum(not_pad, axis=1) * not_pad + PAD_ID
    emb = (jnp.take(fp["word_emb"], ids, axis=0)
           + jnp.take(fp["pos_emb"], pos_ids, axis=0)
           + jnp.take(fp["type_emb"], token_type_ids, axis=0)).reshape(B * S, HID)

    out = pl.pallas_call(
        fused_forward_kernel,
        out_shape=jax.ShapeDtypeStruct((B, OUT_LANES), jnp.float32),
    )(emb, mask.astype(jnp.float32),
      fp["emb_ln_g"], fp["emb_ln_b"],
      fp["wqkv"], fp["bqkv"], fp["wo"], fp["bo"], fp["ln1_g"], fp["ln1_b"],
      fp["wi"], fp["bi"], fp["wf"], fp["bf"], fp["ln2_g"], fp["ln2_b"],
      fp["cls_w1"], fp["cls_b1"], fp["wz"], fp["bz"])
    # all 128 lanes carry the same value; keep the logical (B, 1) output.
    return out[:, :1]


# ----------------------------- main ---------------------------------------------
if __name__ == "__main__":
    key = jax.random.PRNGKey(0)
    pkey, ikey = jax.random.split(key)
    params = init_params(pkey)
    fused = fuse_params(params)

    ids = jax.random.randint(ikey, (B, S), 2, VOCAB, dtype=jnp.int32)
    mask = jnp.ones((B, S), dtype=jnp.int32)
    mask = mask.at[1, -2:].set(0)                        # pad the tail of example 1
    ids = jnp.where(mask == 1, ids, PAD_ID)
    token_type_ids = jnp.zeros((B, S), dtype=jnp.int32)

    out = roberta_twitter_forward(ids, mask, token_type_ids, fused)
    out = jax.block_until_ready(out)
    assert out.shape == (B, 1)
    assert bool(jnp.all((out > 0.0) & (out < 1.0)))
    assert bool(jnp.all(jnp.isfinite(out)))
    print("KERNEL_OK")
</pallas_src>

<mosaic_0001>
module attributes {stable_mosaic.version = 11 : i64} {
  func.func @fused_forward_kernel(%arg0: memref<16x32xf32, #tpu.memory_space<vmem>>, %arg1: memref<2x8xf32, #tpu.memory_space<vmem>>, %arg2: memref<1x32xf32, #tpu.memory_space<vmem>>, %arg3: memref<1x32xf32, #tpu.memory_space<vmem>>, %arg4: memref<2x32x96xf32, #tpu.memory_space<vmem>>, %arg5: memref<2x1x96xf32, #tpu.memory_space<vmem>>, %arg6: memref<2x32x32xf32, #tpu.memory_space<vmem>>, %arg7: memref<2x1x32xf32, #tpu.memory_space<vmem>>, %arg8: memref<2x1x32xf32, #tpu.memory_space<vmem>>, %arg9: memref<2x1x32xf32, #tpu.memory_space<vmem>>, %arg10: memref<2x32x64xf32, #tpu.memory_space<vmem>>, %arg11: memref<2x1x64xf32, #tpu.memory_space<vmem>>, %arg12: memref<2x64x32xf32, #tpu.memory_space<vmem>>, %arg13: memref<2x1x32xf32, #tpu.memory_space<vmem>>, %arg14: memref<2x1x32xf32, #tpu.memory_space<vmem>>, %arg15: memref<2x1x32xf32, #tpu.memory_space<vmem>>, %arg16: memref<32x32xf32, #tpu.memory_space<vmem>>, %arg17: memref<1x32xf32, #tpu.memory_space<vmem>>, %arg18: memref<32x128xf32, #tpu.memory_space<vmem>>, %arg19: memref<1x128xf32, #tpu.memory_space<vmem>>, %arg20: memref<2x128xf32, #tpu.memory_space<vmem>>) attributes {dimension_semantics = [], scalar_prefetch = 0 : i64, scratch_operands = 0 : i64, tpu.core_type = #tpu.core_type<tc>} {
    %c0 = arith.constant 0 : index
    %c0_0 = arith.constant 0 : index
    %0 = vector.load %arg0[%c0, %c0_0] : memref<16x32xf32, #tpu.memory_space<vmem>>, vector<16x32xf32>
    %c0_1 = arith.constant 0 : index
    %c0_2 = arith.constant 0 : index
    %1 = vector.load %arg2[%c0_1, %c0_2] : memref<1x32xf32, #tpu.memory_space<vmem>>, vector<1x32xf32>
    %c0_3 = arith.constant 0 : index
    %c0_4 = arith.constant 0 : index
    %2 = vector.load %arg3[%c0_3, %c0_4] : memref<1x32xf32, #tpu.memory_space<vmem>>, vector<1x32xf32>
    %cst = arith.constant dense<0.000000e+00> : vector<16xf32>
    %3 = vector.multi_reduction <add>, %0, %cst [1] : vector<16x32xf32> to vector<16xf32>
    %4 = vector.shape_cast %3 : vector<16xf32> to vector<16x1xf32>
    %cst_5 = arith.constant 3.200000e+01 : f32
    %5 = vector.broadcast %cst_5 : f32 to vector<16x1xf32>
    %6 = arith.divf %4, %5 : vector<16x1xf32>
    %7 = vector.broadcast %6 : vector<16x1xf32> to vector<16x32xf32>
    %8 = arith.subf %0, %7 : vector<16x32xf32>
    %9 = arith.mulf %8, %8 : vector<16x32xf32>
    %cst_6 = arith.constant dense<0.000000e+00> : vector<16xf32>
    %10 = vector.multi_reduction <add>, %9, %cst_6 [1] : vector<16x32xf32> to vector<16xf32>
    %11 = vector.shape_cast %10 : vector<16xf32> to vector<16x1xf32>
    %cst_7 = arith.constant 3.200000e+01 : f32
    %12 = vector.broadcast %cst_7 : f32 to vector<16x1xf32>
    %13 = arith.divf %11, %12 : vector<16x1xf32>
    %cst_8 = arith.constant 9.99999974E-6 : f32
    %14 = vector.broadcast %cst_8 : f32 to vector<16x1xf32>
    %15 = arith.addf %13, %14 : vector<16x1xf32>
    %16 = math.rsqrt %15 : vector<16x1xf32>
    %17 = vector.broadcast %16 : vector<16x1xf32> to vector<16x32xf32>
    %18 = arith.mulf %8, %17 : vector<16x32xf32>
    %19 = vector.broadcast %1 : vector<1x32xf32> to vector<16x32xf32>
    %20 = arith.mulf %18, %19 : vector<16x32xf32>
    %21 = vector.broadcast %2 : vector<1x32xf32> to vector<16x32xf32>
    %22 = arith.addf %20, %21 : vector<16x32xf32>
    %c0_9 = arith.constant 0 : index
    %c0_10 = arith.constant 0 : index
    %23 = vector.load %arg1[%c0_9, %c0_10] : memref<2x8xf32, #tpu.memory_space<vmem>>, vector<2x8xf32>
    %cst_11 = arith.constant 1.000000e+00 : f32
    %24 = vector.broadcast %cst_11 : f32 to vector<2x8xf32>
    %25 = arith.subf %24, %23 : vector<2x8xf32>
    %cst_12 = arith.constant -1.000000e+09 : f32
    %26 = vector.broadcast %cst_12 : f32 to vector<2x8xf32>
    %27 = arith.mulf %25, %26 : vector<2x8xf32>
    %28 = vector.shape_cast %27 : vector<2x8xf32> to vector<2x1x8xf32>
    %c0_13 = arith.constant 0 : index
    %c0_14 = arith.constant 0 : index
    %c0_15 = arith.constant 0 : index
    %29 = vector.load %arg4[%c0_13, %c0_14, %c0_15] : memref<2x32x96xf32, #tpu.memory_space<vmem>>, vector<1x32x96xf32>
    %30 = vector.shape_cast %29 : vector<1x32x96xf32> to vector<32x96xf32>
    %cst_16 = arith.constant dense<0.000000e+00> : vector<16x96xf32>
    %31 = tpu.matmul %22, %30, %cst_16 {dimension_numbers = #tpu.dot_dimension_numbers<[1], [0], [0], [1], [0, 0, 1, 1], [], []>} : vector<16x32xf32>, vector<32x96xf32>, vector<16x96xf32> -> vector<16x96xf32>
    %c0_17 = arith.constant 0 : index
    %c0_18 = arith.constant 0 : index
    %c0_19 = arith.constant 0 : index
    %32 = vector.load %arg5[%c0_17, %c0_18, %c0_19] : memref<2x1x96xf32, #tpu.memory_space<vmem>>, vector<1x1x96xf32>
    %33 = vector.shape_cast %32 : vector<1x1x96xf32> to vector<1x96xf32>
    %34 = vector.broadcast %33 : vector<1x96xf32> to vector<16x96xf32>
    %35 = arith.addf %31, %34 : vector<16x96xf32>
    %36 = vector.shape_cast %35 : vector<16x96xf32> to vector<2x8x96xf32>
    %37 = vector.extract_strided_slice %36 {offsets = [0, 0, 0], sizes = [2, 8, 16], strides = [1, 1, 1]} : vector<2x8x96xf32> to vector<2x8x16xf32>
    %38 = vector.extract_strided_slice %36 {offsets = [0, 0, 32], sizes = [2, 8, 16], strides = [1, 1, 1]} : vector<2x8x96xf32> to vector<2x8x16xf32>
    %39 = vector.extract_strided_slice %36 {offsets = [0, 0, 64], sizes = [2, 8, 16], strides = [1, 1, 1]} : vector<2x8x96xf32> to vector<2x8x16xf32>
    "tpu.trace_start"() <{level = 10 : i32, message = "bqd,bkd->bqk"}> : () -> ()
    %cst_20 = arith.constant dense<0.000000e+00> : vector<2x8x8xf32>
    %40 = tpu.matmul %37, %38, %cst_20 {dimension_numbers = #tpu.dot_dimension_numbers<[2], [2], [1], [1], [0, 0, 0, 1, 1, 1], [0], [0]>} : vector<2x8x16xf32>, vector<2x8x16xf32>, vector<2x8x8xf32> -> vector<2x8x8xf32>
    "tpu.trace_stop"() : () -> ()
    %cst_21 = arith.constant 2.500000e-01 : f32
    %41 = vector.broadcast %cst_21 : f32 to vector<2x8x8xf32>
    %42 = arith.mulf %40, %41 : vector<2x8x8xf32>
    %43 = vector.broadcast %28 : vector<2x1x8xf32> to vector<2x8x8xf32>
    %44 = arith.addf %42, %43 : vector<2x8x8xf32>
    %cst_22 = arith.constant dense<0xFF800000> : vector<2x8xf32>
    %45 = vector.multi_reduction <maximumf>, %44, %cst_22 [2] : vector<2x8x8xf32> to vector<2x8xf32>
    %46 = vector.shape_cast %45 : vector<2x8xf32> to vector<2x8x1xf32>
    %47 = vector.broadcast %46 : vector<2x8x1xf32> to vector<2x8x8xf32>
    %48 = arith.subf %44, %47 : vector<2x8x8xf32>
    %49 = math.exp %48 : vector<2x8x8xf32>
    %cst_23 = arith.constant dense<0.000000e+00> : vector<2x8xf32>
    %50 = vector.multi_reduction <add>, %49, %cst_23 [2] : vector<2x8x8xf32> to vector<2x8xf32>
    %51 = vector.shape_cast %50 : vector<2x8xf32> to vector<2x8x1xf32>
    %52 = tpu.reciprocal %51 {approx = true} : vector<2x8x1xf32> -> vector<2x8x1xf32>
    %53 = vector.broadcast %52 : vector<2x8x1xf32> to vector<2x8x8xf32>
    %54 = arith.mulf %49, %53 : vector<2x8x8xf32>
    "tpu.trace_start"() <{level = 10 : i32, message = "bqk,bkd->bqd"}> : () -> ()
    %cst_24 = arith.constant dense<0.000000e+00> : vector<2x8x16xf32>
    %55 = tpu.matmul %54, %39, %cst_24 {dimension_numbers = #tpu.dot_dimension_numbers<[2], [1], [1], [2], [0, 0, 0, 1, 1, 2], [0], [0]>} : vector<2x8x8xf32>, vector<2x8x16xf32>, vector<2x8x16xf32> -> vector<2x8x16xf32>
    "tpu.trace_stop"() : () -> ()
    %56 = vector.extract_strided_slice %36 {offsets = [0, 0, 16], sizes = [2, 8, 16], strides = [1, 1, 1]} : vector<2x8x96xf32> to vector<2x8x16xf32>
    %57 = vector.extract_strided_slice %36 {offsets = [0, 0, 48], sizes = [2, 8, 16], strides = [1, 1, 1]} : vector<2x8x96xf32> to vector<2x8x16xf32>
    %58 = vector.extract_strided_slice %36 {offsets = [0, 0, 80], sizes = [2, 8, 16], strides = [1, 1, 1]} : vector<2x8x96xf32> to vector<2x8x16xf32>
    "tpu.trace_start"() <{level = 10 : i32, message = "bqd,bkd->bqk"}> : () -> ()
    %cst_25 = arith.constant dense<0.000000e+00> : vector<2x8x8xf32>
    %59 = tpu.matmul %56, %57, %cst_25 {dimension_numbers = #tpu.dot_dimension_numbers<[2], [2], [1], [1], [0, 0, 0, 1, 1, 1], [0], [0]>} : vector<2x8x16xf32>, vector<2x8x16xf32>, vector<2x8x8xf32> -> vector<2x8x8xf32>
    "tpu.trace_stop"() : () -> ()
    %cst_26 = arith.constant 2.500000e-01 : f32
    %60 = vector.broadcast %cst_26 : f32 to vector<2x8x8xf32>
    %61 = arith.mulf %59, %60 : vector<2x8x8xf32>
    %62 = vector.broadcast %28 : vector<2x1x8xf32> to vector<2x8x8xf32>
    %63 = arith.addf %61, %62 : vector<2x8x8xf32>
    %cst_27 = arith.constant dense<0xFF800000> : vector<2x8xf32>
    %64 = vector.multi_reduction <maximumf>, %63, %cst_27 [2] : vector<2x8x8xf32> to vector<2x8xf32>
    %65 = vector.shape_cast %64 : vector<2x8xf32> to vector<2x8x1xf32>
    %66 = vector.broadcast %65 : vector<2x8x1xf32> to vector<2x8x8xf32>
    %67 = arith.subf %63, %66 : vector<2x8x8xf32>
    %68 = math.exp %67 : vector<2x8x8xf32>
    %cst_28 = arith.constant dense<0.000000e+00> : vector<2x8xf32>
    %69 = vector.multi_reduction <add>, %68, %cst_28 [2] : vector<2x8x8xf32> to vector<2x8xf32>
    %70 = vector.shape_cast %69 : vector<2x8xf32> to vector<2x8x1xf32>
    %71 = tpu.reciprocal %70 {approx = true} : vector<2x8x1xf32> -> vector<2x8x1xf32>
    %72 = vector.broadcast %71 : vector<2x8x1xf32> to vector<2x8x8xf32>
    %73 = arith.mulf %68, %72 : vector<2x8x8xf32>
    "tpu.trace_start"() <{level = 10 : i32, message = "bqk,bkd->bqd"}> : () -> ()
    %cst_29 = arith.constant dense<0.000000e+00> : vector<2x8x16xf32>
    %74 = tpu.matmul %73, %58, %cst_29 {dimension_numbers = #tpu.dot_dimension_numbers<[2], [1], [1], [2], [0, 0, 0, 1, 1, 2], [0], [0]>} : vector<2x8x8xf32>, vector<2x8x16xf32>, vector<2x8x16xf32> -> vector<2x8x16xf32>
    "tpu.trace_stop"() : () -> ()
    %75 = tpu.concatenate %55, %74 in 2 : vector<2x8x16xf32>, vector<2x8x16xf32> -> vector<2x8x32xf32>
    %76 = vector.shape_cast %75 : vector<2x8x32xf32> to vector<16x32xf32>
    %c0_30 = arith.constant 0 : index
    %c0_31 = arith.constant 0 : index
    %c0_32 = arith.constant 0 : index
    %77 = vector.load %arg6[%c0_30, %c0_31, %c0_32] : memref<2x32x32xf32, #tpu.memory_space<vmem>>, vector<1x32x32xf32>
    %78 = vector.shape_cast %77 : vector<1x32x32xf32> to vector<32x32xf32>
    %cst_33 = arith.constant dense<0.000000e+00> : vector<16x32xf32>
    %79 = tpu.matmul %76, %78, %cst_33 {dimension_numbers = #tpu.dot_dimension_numbers<[1], [0], [0], [1], [0, 0, 1, 1], [], []>} : vector<16x32xf32>, vector<32x32xf32>, vector<16x32xf32> -> vector<16x32xf32>
    %c0_34 = arith.constant 0 : index
    %c0_35 = arith.constant 0 : index
    %c0_36 = arith.constant 0 : index
    %80 = vector.load %arg7[%c0_34, %c0_35, %c0_36] : memref<2x1x32xf32, #tpu.memory_space<vmem>>, vector<1x1x32xf32>
    %81 = vector.shape_cast %80 : vector<1x1x32xf32> to vector<1x32xf32>
    %82 = vector.broadcast %81 : vector<1x32xf32> to vector<16x32xf32>
    %83 = arith.addf %79, %82 : vector<16x32xf32>
    %84 = arith.addf %83, %22 : vector<16x32xf32>
    %c0_37 = arith.constant 0 : index
    %c0_38 = arith.constant 0 : index
    %c0_39 = arith.constant 0 : index
    %85 = vector.load %arg8[%c0_37, %c0_38, %c0_39] : memref<2x1x32xf32, #tpu.memory_space<vmem>>, vector<1x1x32xf32>
    %86 = vector.shape_cast %85 : vector<1x1x32xf32> to vector<1x32xf32>
    %c0_40 = arith.constant 0 : index
    %c0_41 = arith.constant 0 : index
    %c0_42 = arith.constant 0 : index
    %87 = vector.load %arg9[%c0_40, %c0_41, %c0_42] : memref<2x1x32xf32, #tpu.memory_space<vmem>>, vector<1x1x32xf32>
    %88 = vector.shape_cast %87 : vector<1x1x32xf32> to vector<1x32xf32>
    %cst_43 = arith.constant dense<0.000000e+00> : vector<16xf32>
    %89 = vector.multi_reduction <add>, %84, %cst_43 [1] : vector<16x32xf32> to vector<16xf32>
    %90 = vector.shape_cast %89 : vector<16xf32> to vector<16x1xf32>
    %cst_44 = arith.constant 3.200000e+01 : f32
    %91 = vector.broadcast %cst_44 : f32 to vector<16x1xf32>
    %92 = arith.divf %90, %91 : vector<16x1xf32>
    %93 = vector.broadcast %92 : vector<16x1xf32> to vector<16x32xf32>
    %94 = arith.subf %84, %93 : vector<16x32xf32>
    %95 = arith.mulf %94, %94 : vector<16x32xf32>
    %cst_45 = arith.constant dense<0.000000e+00> : vector<16xf32>
    %96 = vector.multi_reduction <add>, %95, %cst_45 [1] : vector<16x32xf32> to vector<16xf32>
    %97 = vector.shape_cast %96 : vector<16xf32> to vector<16x1xf32>
    %cst_46 = arith.constant 3.200000e+01 : f32
    %98 = vector.broadcast %cst_46 : f32 to vector<16x1xf32>
    %99 = arith.divf %97, %98 : vector<16x1xf32>
    %cst_47 = arith.constant 9.99999974E-6 : f32
    %100 = vector.broadcast %cst_47 : f32 to vector<16x1xf32>
    %101 = arith.addf %99, %100 : vector<16x1xf32>
    %102 = math.rsqrt %101 : vector<16x1xf32>
    %103 = vector.broadcast %102 : vector<16x1xf32> to vector<16x32xf32>
    %104 = arith.mulf %94, %103 : vector<16x32xf32>
    %105 = vector.broadcast %86 : vector<1x32xf32> to vector<16x32xf32>
    %106 = arith.mulf %104, %105 : vector<16x32xf32>
    %107 = vector.broadcast %88 : vector<1x32xf32> to vector<16x32xf32>
    %108 = arith.addf %106, %107 : vector<16x32xf32>
    %c0_48 = arith.constant 0 : index
    %c0_49 = arith.constant 0 : index
    %c0_50 = arith.constant 0 : index
    %109 = vector.load %arg10[%c0_48, %c0_49, %c0_50] : memref<2x32x64xf32, #tpu.memory_space<vmem>>, vector<1x32x64xf32>
    %110 = vector.shape_cast %109 : vector<1x32x64xf32> to vector<32x64xf32>
    %cst_51 = arith.constant dense<0.000000e+00> : vector<16x64xf32>
    %111 = tpu.matmul %108, %110, %cst_51 {dimension_numbers = #tpu.dot_dimension_numbers<[1], [0], [0], [1], [0, 0, 1, 1], [], []>} : vector<16x32xf32>, vector<32x64xf32>, vector<16x64xf32> -> vector<16x64xf32>
    %c0_52 = arith.constant 0 : index
    %c0_53 = arith.constant 0 : index
    %c0_54 = arith.constant 0 : index
    %112 = vector.load %arg11[%c0_52, %c0_53, %c0_54] : memref<2x1x64xf32, #tpu.memory_space<vmem>>, vector<1x1x64xf32>
    %113 = vector.shape_cast %112 : vector<1x1x64xf32> to vector<1x64xf32>
    %114 = vector.broadcast %113 : vector<1x64xf32> to vector<16x64xf32>
    %115 = arith.addf %111, %114 : vector<16x64xf32>
    %cst_55 = arith.constant 5.000000e-01 : f32
    %116 = vector.broadcast %cst_55 : f32 to vector<16x64xf32>
    %117 = arith.mulf %116, %115 : vector<16x64xf32>
    %cst_56 = arith.constant 4.471500e-02 : f32
    %118 = vector.broadcast %cst_56 : f32 to vector<16x64xf32>
    %119 = arith.mulf %118, %115 : vector<16x64xf32>
    %120 = arith.mulf %119, %115 : vector<16x64xf32>
    %121 = arith.mulf %120, %115 : vector<16x64xf32>
    %122 = arith.addf %115, %121 : vector<16x64xf32>
    %cst_57 = arith.constant 0.797884583 : f32
    %123 = vector.broadcast %cst_57 : f32 to vector<16x64xf32>
    %124 = arith.mulf %123, %122 : vector<16x64xf32>
    %125 = math.tanh %124 : vector<16x64xf32>
    %cst_58 = arith.constant 1.000000e+00 : f32
    %126 = vector.broadcast %cst_58 : f32 to vector<16x64xf32>
    %127 = arith.addf %126, %125 : vector<16x64xf32>
    %128 = arith.mulf %117, %127 : vector<16x64xf32>
    %c0_59 = arith.constant 0 : index
    %c0_60 = arith.constant 0 : index
    %c0_61 = arith.constant 0 : index
    %129 = vector.load %arg12[%c0_59, %c0_60, %c0_61] : memref<2x64x32xf32, #tpu.memory_space<vmem>>, vector<1x64x32xf32>
    %130 = vector.shape_cast %129 : vector<1x64x32xf32> to vector<64x32xf32>
    %cst_62 = arith.constant dense<0.000000e+00> : vector<16x32xf32>
    %131 = tpu.matmul %128, %130, %cst_62 {dimension_numbers = #tpu.dot_dimension_numbers<[1], [0], [0], [1], [0, 0, 1, 1], [], []>} : vector<16x64xf32>, vector<64x32xf32>, vector<16x32xf32> -> vector<16x32xf32>
    %c0_63 = arith.constant 0 : index
    %c0_64 = arith.constant 0 : index
    %c0_65 = arith.constant 0 : index
    %132 = vector.load %arg13[%c0_63, %c0_64, %c0_65] : memref<2x1x32xf32, #tpu.memory_space<vmem>>, vector<1x1x32xf32>
    %133 = vector.shape_cast %132 : vector<1x1x32xf32> to vector<1x32xf32>
    %134 = vector.broadcast %133 : vector<1x32xf32> to vector<16x32xf32>
    %135 = arith.addf %131, %134 : vector<16x32xf32>
    %136 = arith.addf %135, %108 : vector<16x32xf32>
    %c0_66 = arith.constant 0 : index
    %c0_67 = arith.constant 0 : index
    %c0_68 = arith.constant 0 : index
    %137 = vector.load %arg14[%c0_66, %c0_67, %c0_68] : memref<2x1x32xf32, #tpu.memory_space<vmem>>, vector<1x1x32xf32>
    %138 = vector.shape_cast %137 : vector<1x1x32xf32> to vector<1x32xf32>
    %c0_69 = arith.constant 0 : index
    %c0_70 = arith.constant 0 : index
    %c0_71 = arith.constant 0 : index
    %139 = vector.load %arg15[%c0_69, %c0_70, %c0_71] : memref<2x1x32xf32, #tpu.memory_space<vmem>>, vector<1x1x32xf32>
    %140 = vector.shape_cast %139 : vector<1x1x32xf32> to vector<1x32xf32>
    %cst_72 = arith.constant dense<0.000000e+00> : vector<16xf32>
    %141 = vector.multi_reduction <add>, %136, %cst_72 [1] : vector<16x32xf32> to vector<16xf32>
    %142 = vector.shape_cast %141 : vector<16xf32> to vector<16x1xf32>
    %cst_73 = arith.constant 3.200000e+01 : f32
    %143 = vector.broadcast %cst_73 : f32 to vector<16x1xf32>
    %144 = arith.divf %142, %143 : vector<16x1xf32>
    %145 = vector.broadcast %144 : vector<16x1xf32> to vector<16x32xf32>
    %146 = arith.subf %136, %145 : vector<16x32xf32>
    %147 = arith.mulf %146, %146 : vector<16x32xf32>
    %cst_74 = arith.constant dense<0.000000e+00> : vector<16xf32>
    %148 = vector.multi_reduction <add>, %147, %cst_74 [1] : vector<16x32xf32> to vector<16xf32>
    %149 = vector.shape_cast %148 : vector<16xf32> to vector<16x1xf32>
    %cst_75 = arith.constant 3.200000e+01 : f32
    %150 = vector.broadcast %cst_75 : f32 to vector<16x1xf32>
    %151 = arith.divf %149, %150 : vector<16x1xf32>
    %cst_76 = arith.constant 9.99999974E-6 : f32
    %152 = vector.broadcast %cst_76 : f32 to vector<16x1xf32>
    %153 = arith.addf %151, %152 : vector<16x1xf32>
    %154 = math.rsqrt %153 : vector<16x1xf32>
    %155 = vector.broadcast %154 : vector<16x1xf32> to vector<16x32xf32>
    %156 = arith.mulf %146, %155 : vector<16x32xf32>
    %157 = vector.broadcast %138 : vector<1x32xf32> to vector<16x32xf32>
    %158 = arith.mulf %156, %157 : vector<16x32xf32>
    %159 = vector.broadcast %140 : vector<1x32xf32> to vector<16x32xf32>
    %160 = arith.addf %158, %159 : vector<16x32xf32>
    %c1 = arith.constant 1 : index
    %c0_77 = arith.constant 0 : index
    %c0_78 = arith.constant 0 : index
    %161 = vector.load %arg4[%c1, %c0_77, %c0_78] : memref<2x32x96xf32, #tpu.memory_space<vmem>>, vector<1x32x96xf32>
    %162 = vector.shape_cast %161 : vector<1x32x96xf32> to vector<32x96xf32>
    %cst_79 = arith.constant dense<0.000000e+00> : vector<16x96xf32>
    %163 = tpu.matmul %160, %162, %cst_79 {dimension_numbers = #tpu.dot_dimension_numbers<[1], [0], [0], [1], [0, 0, 1, 1], [], []>} : vector<16x32xf32>, vector<32x96xf32>, vector<16x96xf32> -> vector<16x96xf32>
    %c1_80 = arith.constant 1 : index
    %c0_81 = arith.constant 0 : index
    %c0_82 = arith.constant 0 : index
    %164 = vector.load %arg5[%c1_80, %c0_81, %c0_82] : memref<2x1x96xf32, #tpu.memory_space<vmem>>, vector<1x1x96xf32>
    %165 = vector.shape_cast %164 : vector<1x1x96xf32> to vector<1x96xf32>
    %166 = vector.broadcast %165 : vector<1x96xf32> to vector<16x96xf32>
    %167 = arith.addf %163, %166 : vector<16x96xf32>
    %168 = vector.shape_cast %167 : vector<16x96xf32> to vector<2x8x96xf32>
    %169 = vector.extract_strided_slice %168 {offsets = [0, 0, 0], sizes = [2, 8, 16], strides = [1, 1, 1]} : vector<2x8x96xf32> to vector<2x8x16xf32>
    %170 = vector.extract_strided_slice %168 {offsets = [0, 0, 32], sizes = [2, 8, 16], strides = [1, 1, 1]} : vector<2x8x96xf32> to vector<2x8x16xf32>
    %171 = vector.extract_strided_slice %168 {offsets = [0, 0, 64], sizes = [2, 8, 16], strides = [1, 1, 1]} : vector<2x8x96xf32> to vector<2x8x16xf32>
    "tpu.trace_start"() <{level = 10 : i32, message = "bqd,bkd->bqk"}> : () -> ()
    %cst_83 = arith.constant dense<0.000000e+00> : vector<2x8x8xf32>
    %172 = tpu.matmul %169, %170, %cst_83 {dimension_numbers = #tpu.dot_dimension_numbers<[2], [2], [1], [1], [0, 0, 0, 1, 1, 1], [0], [0]>} : vector<2x8x16xf32>, vector<2x8x16xf32>, vector<2x8x8xf32> -> vector<2x8x8xf32>
    "tpu.trace_stop"() : () -> ()
    %cst_84 = arith.constant 2.500000e-01 : f32
    %173 = vector.broadcast %cst_84 : f32 to vector<2x8x8xf32>
    %174 = arith.mulf %172, %173 : vector<2x8x8xf32>
    %175 = vector.broadcast %28 : vector<2x1x8xf32> to vector<2x8x8xf32>
    %176 = arith.addf %174, %175 : vector<2x8x8xf32>
    %cst_85 = arith.constant dense<0xFF800000> : vector<2x8xf32>
    %177 = vector.multi_reduction <maximumf>, %176, %cst_85 [2] : vector<2x8x8xf32> to vector<2x8xf32>
    %178 = vector.shape_cast %177 : vector<2x8xf32> to vector<2x8x1xf32>
    %179 = vector.broadcast %178 : vector<2x8x1xf32> to vector<2x8x8xf32>
    %180 = arith.subf %176, %179 : vector<2x8x8xf32>
    %181 = math.exp %180 : vector<2x8x8xf32>
    %cst_86 = arith.constant dense<0.000000e+00> : vector<2x8xf32>
    %182 = vector.multi_reduction <add>, %181, %cst_86 [2] : vector<2x8x8xf32> to vector<2x8xf32>
    %183 = vector.shape_cast %182 : vector<2x8xf32> to vector<2x8x1xf32>
    %184 = tpu.reciprocal %183 {approx = true} : vector<2x8x1xf32> -> vector<2x8x1xf32>
    %185 = vector.broadcast %184 : vector<2x8x1xf32> to vector<2x8x8xf32>
    %186 = arith.mulf %181, %185 : vector<2x8x8xf32>
    "tpu.trace_start"() <{level = 10 : i32, message = "bqk,bkd->bqd"}> : () -> ()
    %cst_87 = arith.constant dense<0.000000e+00> : vector<2x8x16xf32>
    %187 = tpu.matmul %186, %171, %cst_87 {dimension_numbers = #tpu.dot_dimension_numbers<[2], [1], [1], [2], [0, 0, 0, 1, 1, 2], [0], [0]>} : vector<2x8x8xf32>, vector<2x8x16xf32>, vector<2x8x16xf32> -> vector<2x8x16xf32>
    "tpu.trace_stop"() : () -> ()
    %188 = vector.extract_strided_slice %168 {offsets = [0, 0, 16], sizes = [2, 8, 16], strides = [1, 1, 1]} : vector<2x8x96xf32> to vector<2x8x16xf32>
    %189 = vector.extract_strided_slice %168 {offsets = [0, 0, 48], sizes = [2, 8, 16], strides = [1, 1, 1]} : vector<2x8x96xf32> to vector<2x8x16xf32>
    %190 = vector.extract_strided_slice %168 {offsets = [0, 0, 80], sizes = [2, 8, 16], strides = [1, 1, 1]} : vector<2x8x96xf32> to vector<2x8x16xf32>
    "tpu.trace_start"() <{level = 10 : i32, message = "bqd,bkd->bqk"}> : () -> ()
    %cst_88 = arith.constant dense<0.000000e+00> : vector<2x8x8xf32>
    %191 = tpu.matmul %188, %189, %cst_88 {dimension_numbers = #tpu.dot_dimension_numbers<[2], [2], [1], [1], [0, 0, 0, 1, 1, 1], [0], [0]>} : vector<2x8x16xf32>, vector<2x8x16xf32>, vector<2x8x8xf32> -> vector<2x8x8xf32>
    "tpu.trace_stop"() : () -> ()
    %cst_89 = arith.constant 2.500000e-01 : f32
    %192 = vector.broadcast %cst_89 : f32 to vector<2x8x8xf32>
    %193 = arith.mulf %191, %192 : vector<2x8x8xf32>
    %194 = vector.broadcast %28 : vector<2x1x8xf32> to vector<2x8x8xf32>
    %195 = arith.addf %193, %194 : vector<2x8x8xf32>
    %cst_90 = arith.constant dense<0xFF800000> : vector<2x8xf32>
    %196 = vector.multi_reduction <maximumf>, %195, %cst_90 [2] : vector<2x8x8xf32> to vector<2x8xf32>
    %197 = vector.shape_cast %196 : vector<2x8xf32> to vector<2x8x1xf32>
    %198 = vector.broadcast %197 : vector<2x8x1xf32> to vector<2x8x8xf32>
    %199 = arith.subf %195, %198 : vector<2x8x8xf32>
    %200 = math.exp %199 : vector<2x8x8xf32>
    %cst_91 = arith.constant dense<0.000000e+00> : vector<2x8xf32>
    %201 = vector.multi_reduction <add>, %200, %cst_91 [2] : vector<2x8x8xf32> to vector<2x8xf32>
    %202 = vector.shape_cast %201 : vector<2x8xf32> to vector<2x8x1xf32>
    %203 = tpu.reciprocal %202 {approx = true} : vector<2x8x1xf32> -> vector<2x8x1xf32>
    %204 = vector.broadcast %203 : vector<2x8x1xf32> to vector<2x8x8xf32>
    %205 = arith.mulf %200, %204 : vector<2x8x8xf32>
    "tpu.trace_start"() <{level = 10 : i32, message = "bqk,bkd->bqd"}> : () -> ()
    %cst_92 = arith.constant dense<0.000000e+00> : vector<2x8x16xf32>
    %206 = tpu.matmul %205, %190, %cst_92 {dimension_numbers = #tpu.dot_dimension_numbers<[2], [1], [1], [2], [0, 0, 0, 1, 1, 2], [0], [0]>} : vector<2x8x8xf32>, vector<2x8x16xf32>, vector<2x8x16xf32> -> vector<2x8x16xf32>
    "tpu.trace_stop"() : () -> ()
    %207 = tpu.concatenate %187, %206 in 2 : vector<2x8x16xf32>, vector<2x8x16xf32> -> vector<2x8x32xf32>
    %208 = vector.shape_cast %207 : vector<2x8x32xf32> to vector<16x32xf32>
    %c1_93 = arith.constant 1 : index
    %c0_94 = arith.constant 0 : index
    %c0_95 = arith.constant 0 : index
    %209 = vector.load %arg6[%c1_93, %c0_94, %c0_95] : memref<2x32x32xf32, #tpu.memory_space<vmem>>, vector<1x32x32xf32>
    %210 = vector.shape_cast %209 : vector<1x32x32xf32> to vector<32x32xf32>
    %cst_96 = arith.constant dense<0.000000e+00> : vector<16x32xf32>
    %211 = tpu.matmul %208, %210, %cst_96 {dimension_numbers = #tpu.dot_dimension_numbers<[1], [0], [0], [1], [0, 0, 1, 1], [], []>} : vector<16x32xf32>, vector<32x32xf32>, vector<16x32xf32> -> vector<16x32xf32>
    %c1_97 = arith.constant 1 : index
    %c0_98 = arith.constant 0 : index
    %c0_99 = arith.constant 0 : index
    %212 = vector.load %arg7[%c1_97, %c0_98, %c0_99] : memref<2x1x32xf32, #tpu.memory_space<vmem>>, vector<1x1x32xf32>
    %213 = vector.shape_cast %212 : vector<1x1x32xf32> to vector<1x32xf32>
    %214 = vector.broadcast %213 : vector<1x32xf32> to vector<16x32xf32>
    %215 = arith.addf %211, %214 : vector<16x32xf32>
    %216 = arith.addf %215, %160 : vector<16x32xf32>
    %c1_100 = arith.constant 1 : index
    %c0_101 = arith.constant 0 : index
    %c0_102 = arith.constant 0 : index
    %217 = vector.load %arg8[%c1_100, %c0_101, %c0_102] : memref<2x1x32xf32, #tpu.memory_space<vmem>>, vector<1x1x32xf32>
    %218 = vector.shape_cast %217 : vector<1x1x32xf32> to vector<1x32xf32>
    %c1_103 = arith.constant 1 : index
    %c0_104 = arith.constant 0 : index
    %c0_105 = arith.constant 0 : index
    %219 = vector.load %arg9[%c1_103, %c0_104, %c0_105] : memref<2x1x32xf32, #tpu.memory_space<vmem>>, vector<1x1x32xf32>
    %220 = vector.shape_cast %219 : vector<1x1x32xf32> to vector<1x32xf32>
    %cst_106 = arith.constant dense<0.000000e+00> : vector<16xf32>
    %221 = vector.multi_reduction <add>, %216, %cst_106 [1] : vector<16x32xf32> to vector<16xf32>
    %222 = vector.shape_cast %221 : vector<16xf32> to vector<16x1xf32>
    %cst_107 = arith.constant 3.200000e+01 : f32
    %223 = vector.broadcast %cst_107 : f32 to vector<16x1xf32>
    %224 = arith.divf %222, %223 : vector<16x1xf32>
    %225 = vector.broadcast %224 : vector<16x1xf32> to vector<16x32xf32>
    %226 = arith.subf %216, %225 : vector<16x32xf32>
    %227 = arith.mulf %226, %226 : vector<16x32xf32>
    %cst_108 = arith.constant dense<0.000000e+00> : vector<16xf32>
    %228 = vector.multi_reduction <add>, %227, %cst_108 [1] : vector<16x32xf32> to vector<16xf32>
    %229 = vector.shape_cast %228 : vector<16xf32> to vector<16x1xf32>
    %cst_109 = arith.constant 3.200000e+01 : f32
    %230 = vector.broadcast %cst_109 : f32 to vector<16x1xf32>
    %231 = arith.divf %229, %230 : vector<16x1xf32>
    %cst_110 = arith.constant 9.99999974E-6 : f32
    %232 = vector.broadcast %cst_110 : f32 to vector<16x1xf32>
    %233 = arith.addf %231, %232 : vector<16x1xf32>
    %234 = math.rsqrt %233 : vector<16x1xf32>
    %235 = vector.broadcast %234 : vector<16x1xf32> to vector<16x32xf32>
    %236 = arith.mulf %226, %235 : vector<16x32xf32>
    %237 = vector.broadcast %218 : vector<1x32xf32> to vector<16x32xf32>
    %238 = arith.mulf %236, %237 : vector<16x32xf32>
    %239 = vector.broadcast %220 : vector<1x32xf32> to vector<16x32xf32>
    %240 = arith.addf %238, %239 : vector<16x32xf32>
    %c1_111 = arith.constant 1 : index
    %c0_112 = arith.constant 0 : index
    %c0_113 = arith.constant 0 : index
    %241 = vector.load %arg10[%c1_111, %c0_112, %c0_113] : memref<2x32x64xf32, #tpu.memory_space<vmem>>, vector<1x32x64xf32>
    %242 = vector.shape_cast %241 : vector<1x32x64xf32> to vector<32x64xf32>
    %cst_114 = arith.constant dense<0.000000e+00> : vector<16x64xf32>
    %243 = tpu.matmul %240, %242, %cst_114 {dimension_numbers = #tpu.dot_dimension_numbers<[1], [0], [0], [1], [0, 0, 1, 1], [], []>} : vector<16x32xf32>, vector<32x64xf32>, vector<16x64xf32> -> vector<16x64xf32>
    %c1_115 = arith.constant 1 : index
    %c0_116 = arith.constant 0 : index
    %c0_117 = arith.constant 0 : index
    %244 = vector.load %arg11[%c1_115, %c0_116, %c0_117] : memref<2x1x64xf32, #tpu.memory_space<vmem>>, vector<1x1x64xf32>
    %245 = vector.shape_cast %244 : vector<1x1x64xf32> to vector<1x64xf32>
    %246 = vector.broadcast %245 : vector<1x64xf32> to vector<16x64xf32>
    %247 = arith.addf %243, %246 : vector<16x64xf32>
    %cst_118 = arith.constant 5.000000e-01 : f32
    %248 = vector.broadcast %cst_118 : f32 to vector<16x64xf32>
    %249 = arith.mulf %248, %247 : vector<16x64xf32>
    %cst_119 = arith.constant 4.471500e-02 : f32
    %250 = vector.broadcast %cst_119 : f32 to vector<16x64xf32>
    %251 = arith.mulf %250, %247 : vector<16x64xf32>
    %252 = arith.mulf %251, %247 : vector<16x64xf32>
    %253 = arith.mulf %252, %247 : vector<16x64xf32>
    %254 = arith.addf %247, %253 : vector<16x64xf32>
    %cst_120 = arith.constant 0.797884583 : f32
    %255 = vector.broadcast %cst_120 : f32 to vector<16x64xf32>
    %256 = arith.mulf %255, %254 : vector<16x64xf32>
    %257 = math.tanh %256 : vector<16x64xf32>
    %cst_121 = arith.constant 1.000000e+00 : f32
    %258 = vector.broadcast %cst_121 : f32 to vector<16x64xf32>
    %259 = arith.addf %258, %257 : vector<16x64xf32>
    %260 = arith.mulf %249, %259 : vector<16x64xf32>
    %c1_122 = arith.constant 1 : index
    %c0_123 = arith.constant 0 : index
    %c0_124 = arith.constant 0 : index
    %261 = vector.load %arg12[%c1_122, %c0_123, %c0_124] : memref<2x64x32xf32, #tpu.memory_space<vmem>>, vector<1x64x32xf32>
    %262 = vector.shape_cast %261 : vector<1x64x32xf32> to vector<64x32xf32>
    %cst_125 = arith.constant dense<0.000000e+00> : vector<16x32xf32>
    %263 = tpu.matmul %260, %262, %cst_125 {dimension_numbers = #tpu.dot_dimension_numbers<[1], [0], [0], [1], [0, 0, 1, 1], [], []>} : vector<16x64xf32>, vector<64x32xf32>, vector<16x32xf32> -> vector<16x32xf32>
    %c1_126 = arith.constant 1 : index
    %c0_127 = arith.constant 0 : index
    %c0_128 = arith.constant 0 : index
    %264 = vector.load %arg13[%c1_126, %c0_127, %c0_128] : memref<2x1x32xf32, #tpu.memory_space<vmem>>, vector<1x1x32xf32>
    %265 = vector.shape_cast %264 : vector<1x1x32xf32> to vector<1x32xf32>
    %266 = vector.broadcast %265 : vector<1x32xf32> to vector<16x32xf32>
    %267 = arith.addf %263, %266 : vector<16x32xf32>
    %268 = arith.addf %267, %240 : vector<16x32xf32>
    %c1_129 = arith.constant 1 : index
    %c0_130 = arith.constant 0 : index
    %c0_131 = arith.constant 0 : index
    %269 = vector.load %arg14[%c1_129, %c0_130, %c0_131] : memref<2x1x32xf32, #tpu.memory_space<vmem>>, vector<1x1x32xf32>
    %270 = vector.shape_cast %269 : vector<1x1x32xf32> to vector<1x32xf32>
    %c1_132 = arith.constant 1 : index
    %c0_133 = arith.constant 0 : index
    %c0_134 = arith.constant 0 : index
    %271 = vector.load %arg15[%c1_132, %c0_133, %c0_134] : memref<2x1x32xf32, #tpu.memory_space<vmem>>, vector<1x1x32xf32>
    %272 = vector.shape_cast %271 : vector<1x1x32xf32> to vector<1x32xf32>
    %cst_135 = arith.constant dense<0.000000e+00> : vector<16xf32>
    %273 = vector.multi_reduction <add>, %268, %cst_135 [1] : vector<16x32xf32> to vector<16xf32>
    %274 = vector.shape_cast %273 : vector<16xf32> to vector<16x1xf32>
    %cst_136 = arith.constant 3.200000e+01 : f32
    %275 = vector.broadcast %cst_136 : f32 to vector<16x1xf32>
    %276 = arith.divf %274, %275 : vector<16x1xf32>
    %277 = vector.broadcast %276 : vector<16x1xf32> to vector<16x32xf32>
    %278 = arith.subf %268, %277 : vector<16x32xf32>
    %279 = arith.mulf %278, %278 : vector<16x32xf32>
    %cst_137 = arith.constant dense<0.000000e+00> : vector<16xf32>
    %280 = vector.multi_reduction <add>, %279, %cst_137 [1] : vector<16x32xf32> to vector<16xf32>
    %281 = vector.shape_cast %280 : vector<16xf32> to vector<16x1xf32>
    %cst_138 = arith.constant 3.200000e+01 : f32
    %282 = vector.broadcast %cst_138 : f32 to vector<16x1xf32>
    %283 = arith.divf %281, %282 : vector<16x1xf32>
    %cst_139 = arith.constant 9.99999974E-6 : f32
    %284 = vector.broadcast %cst_139 : f32 to vector<16x1xf32>
    %285 = arith.addf %283, %284 : vector<16x1xf32>
    %286 = math.rsqrt %285 : vector<16x1xf32>
    %287 = vector.broadcast %286 : vector<16x1xf32> to vector<16x32xf32>
    %288 = arith.mulf %278, %287 : vector<16x32xf32>
    %289 = vector.broadcast %270 : vector<1x32xf32> to vector<16x32xf32>
    %290 = arith.mulf %288, %289 : vector<16x32xf32>
    %291 = vector.broadcast %272 : vector<1x32xf32> to vector<16x32xf32>
    %292 = arith.addf %290, %291 : vector<16x32xf32>
    %293 = vector.extract_strided_slice %292 {offsets = [0, 0], sizes = [1, 32], strides = [1, 1]} : vector<16x32xf32> to vector<1x32xf32>
    %294 = vector.extract_strided_slice %292 {offsets = [8, 0], sizes = [1, 32], strides = [1, 1]} : vector<16x32xf32> to vector<1x32xf32>
    %295 = tpu.concatenate %293, %294 in 0 : vector<1x32xf32>, vector<1x32xf32> -> vector<2x32xf32>
    %c0_140 = arith.constant 0 : index
    %c0_141 = arith.constant 0 : index
    %296 = vector.load %arg16[%c0_140, %c0_141] : memref<32x32xf32, #tpu.memory_space<vmem>>, vector<32x32xf32>
    %cst_142 = arith.constant dense<0.000000e+00> : vector<2x32xf32>
    %297 = tpu.matmul %295, %296, %cst_142 {dimension_numbers = #tpu.dot_dimension_numbers<[1], [0], [0], [1], [0, 0, 1, 1], [], []>} : vector<2x32xf32>, vector<32x32xf32>, vector<2x32xf32> -> vector<2x32xf32>
    %c0_143 = arith.constant 0 : index
    %c0_144 = arith.constant 0 : index
    %298 = vector.load %arg17[%c0_143, %c0_144] : memref<1x32xf32, #tpu.memory_space<vmem>>, vector<1x32xf32>
    %299 = vector.broadcast %298 : vector<1x32xf32> to vector<2x32xf32>
    %300 = arith.addf %297, %299 : vector<2x32xf32>
    %301 = math.tanh %300 : vector<2x32xf32>
    %c0_145 = arith.constant 0 : index
    %c0_146 = arith.constant 0 : index
    %302 = vector.load %arg18[%c0_145, %c0_146] : memref<32x128xf32, #tpu.memory_space<vmem>>, vector<32x128xf32>
    %cst_147 = arith.constant dense<0.000000e+00> : vector<2x128xf32>
    %303 = tpu.matmul %301, %302, %cst_147 {dimension_numbers = #tpu.dot_dimension_numbers<[1], [0], [0], [1], [0, 0, 1, 1], [], []>} : vector<2x32xf32>, vector<32x128xf32>, vector<2x128xf32> -> vector<2x128xf32>
    %c0_148 = arith.constant 0 : index
    %c0_149 = arith.constant 0 : index
    %304 = vector.load %arg19[%c0_148, %c0_149] : memref<1x128xf32, #tpu.memory_space<vmem>>, vector<1x128xf32>
    %305 = vector.broadcast %304 : vector<1x128xf32> to vector<2x128xf32>
    %306 = arith.addf %303, %305 : vector<2x128xf32>
    %307 = math.absf %306 : vector<2x128xf32>
    %cst_150 = arith.constant 0.000000e+00 : f32
    %308 = vector.broadcast %cst_150 : f32 to vector<2x128xf32>
    %309 = arith.subf %308, %307 : vector<2x128xf32>
    %310 = math.exp %309 : vector<2x128xf32>
    %cst_151 = arith.constant 0.000000e+00 : f32
    %311 = vector.broadcast %cst_151 : f32 to vector<2x128xf32>
    %312 = arith.cmpf oge, %306, %311 : vector<2x128xf32>
    %cst_152 = arith.constant 1.000000e+00 : f32
    %313 = vector.broadcast %cst_152 : f32 to vector<2x128xf32>
    %314 = arith.addf %313, %310 : vector<2x128xf32>
    %cst_153 = arith.constant 1.000000e+00 : f32
    %315 = vector.broadcast %cst_153 : f32 to vector<2x128xf32>
    %316 = arith.divf %315, %314 : vector<2x128xf32>
    %cst_154 = arith.constant 1.000000e+00 : f32
    %317 = vector.broadcast %cst_154 : f32 to vector<2x128xf32>
    %318 = arith.addf %317, %310 : vector<2x128xf32>
    %319 = arith.divf %310, %318 : vector<2x128xf32>
    %320 = arith.select %312, %316, %319 : vector<2x128xi1>, vector<2x128xf32>
    %c0_155 = arith.constant 0 : index
    %c0_156 = arith.constant 0 : index
    %321 = vector.load %arg20[%c0_155, %c0_156] : memref<2x128xf32, #tpu.memory_space<vmem>>, vector<2x128xf32>
    tpu.vector_store %arg20[%c0_155, %c0_156], %320 {strides = array<i32>} : memref<2x128xf32, #tpu.memory_space<vmem>>, vector<2x128xf32>,
    return
  }
}

</mosaic_0001>

<bundles_post_ra>
// kernel: roberta_twitter_forward.1
= control target key start
LH: loop header
LB: loop body
LE: loop exit
PB: predicated region body
PF: predicated region fallthrough
CT: control target
= control target key end

     0   :  { %vm69_vm0 = vcmask 261120   ;;  %v3138_v34 = vmov 0.0   ;;  %vm3139_vm1 = vmmov 0   ;;  %s3140_s28 = smov 96   ;;  %vm234_vm2 = vcmask 130048   ;;  %s3143_s30 = smov 80   ;;  %s3718_s0 = inlined_call_operand.vmem [shape: f32[16,32], index: 0, kind: input, shape index: {}]   ;;  %s3719_s4 = inlined_call_operand.vmem [shape: f32[2,32,96], index: 4, kind: input, shape index: {}]   ;;  %s3720_s2 = inlined_call_operand.vmem [shape: f32[1,32], index: 2, kind: input, shape index: {}]   ;;  %s3721_s3 = inlined_call_operand.vmem [shape: f32[1,32], index: 3, kind: input, shape index: {}]   ;;  %s3722_s5 = inlined_call_operand.vmem [shape: f32[2,1,96], index: 5, kind: input, shape index: {}]   ;;  %s3723_s1 = inlined_call_operand.vmem [shape: f32[2,8], index: 1, kind: input, shape index: {}]   ;;  %s3724_s6 = inlined_call_operand.vmem [shape: f32[2,32,32], index: 6, kind: input, shape index: {}]   ;;  %s3725_s7 = inlined_call_operand.vmem [shape: f32[2,1,32], index: 7, kind: input, shape index: {}]   ;;  %s3726_s10 = inlined_call_operand.vmem [shape: f32[2,32,64], index: 10, kind: input, shape index: {}]   ;;  %s3727_s8 = inlined_call_operand.vmem [shape: f32[2,1,32], index: 8, kind: input, shape index: {}]   ;;  %s3728_s9 = inlined_call_operand.vmem [shape: f32[2,1,32], index: 9, kind: input, shape index: {}]   ;;  %s3729_s12 = inlined_call_operand.vmem [shape: f32[2,64,32], index: 12, kind: input, shape index: {}]   ;;  %s3730_s11 = inlined_call_operand.vmem [shape: f32[2,1,64], index: 11, kind: input, shape index: {}]   ;;  %s3731_s13 = inlined_call_operand.vmem [shape: f32[2,1,32], index: 13, kind: input, shape index: {}]   ;;  %s3732_s14 = inlined_call_operand.vmem [shape: f32[2,1,32], index: 14, kind: input, shape index: {}]   ;;  %s3733_s15 = inlined_call_operand.vmem [shape: f32[2,1,32], index: 15, kind: input, shape index: {}]   ;;  %s3734_s16 = inlined_call_operand.vmem [shape: f32[32,32], index: 16, kind: input, shape index: {}]   ;;  %s3735_s18 = inlined_call_operand.vmem [shape: f32[32,128], index: 18, kind: input, shape index: {}]   ;;  %s3736_s17 = inlined_call_operand.vmem [shape: f32[1,32], index: 17, kind: input, shape index: {}]   ;;  %s3737_s19 = inlined_call_operand.vmem [shape: f32[1,128], index: 19, kind: input, shape index: {}]   ;;  %s3738_s20 = inlined_call_operand.vmem [shape: f32[2,128], index: 20, kind: output, shape index: {}]  }
   0x1   :  { %3742 = sst [smem:[#allocation2_spill]] %s3718_s0  ;;  %2868 = vmatprep.subr.mxu1 %v3138_v34  ;;  %2870 = vmatprep.mubr.msk.f32.mxu1 %vm3139_vm1, %v3138_v34  ;;  %v3141_v42 = vmov 1966171168   ;;  %v120_v44 = vlaneseq  ;;  %v113_v45 = vld [vmem:[%s3723_s1] sm:$0x3]  ;;  %vm400_vm3 = vcmask 64512  }
   0x2   :  { %3743 = sst [smem:[#allocation3_spill]] %s3719_s4  ;;  %v118_v43 = vunpack.c.l.s4 %v3141_v42  ;;  %v114_v46 = vsub.f32 1.0, %v113_v45  ;;  %s3142_s1 = smov 64   ;;  %vm1182_vm4 = vcmask 523264   ;;  %vm2483_vm5 = vcmask 1040384  }
   0x3   :  { %3744 = sst [smem:[#allocation4_spill]] %s3720_s2  ;;  %v121_v48 = vshrl.u32 %v120_v44, 7  ;;  %s3144_s0 = smov 112  }
   0x4   :  { %3745 = sst [smem:[#allocation5_spill]] %s3721_s3  ;;  %v119_v47 = vunpack.c.0.s8 %v118_v43  ;;  %v115_v49 = vmul.f32 -1e+09, %v114_v46  ;;  %s3145_s21 = smov 48  }
   0x5   :  { %3746 = sst [smem:[#allocation6_spill]] %s3722_s5  ;;  %v390_v53 = vsub.s32 0, %v121_v48  ;;  %s3146_s29 = smov 16  }
   0x6   :  { %s3747_s23 = sld [smem:[#allocation2_spill]]  ;;  %v122_v50 = vsub.s32 %v119_v47, %v121_v48 }
   0x7   :  { %s3748_s26 = sld [smem:[#allocation3_spill]] }
   0x8   :  { %s3749_s22 = sld [smem:[#allocation4_spill]]  ;;  %v123_v51 = vrot.slane %v115_v49, %v122_v50 }
   0x9   :  { %s3750_s2 = sld [smem:[#allocation5_spill]] }
   0xa   :  { %s3751_s27 = sld [smem:[#allocation6_spill]]  ;;  %v131_v52 = vrot.slane %v123_v51, %v122_v50  ;;  %v124_v54 = vcombine.high %v123_v51, %v123_v51 }
   0xc   :  { %v65_v0 = vld [vmem:[%s3747_s23] sm:$0xff]  ;;  %v66_v1 = vld [vmem:[%s3747_s23 + $0x8] sm:$0xff]  ;;  %v3320_v55 = vrot.slane %v131_v52, %v390_v53  ;;  %v138_v56 = vrot.slane %v124_v54, %v122_v50 }
   0xd   :  { %v70_v2 = vsel %vm69_vm0, %v65_v0, 0.0  ;;  %v73_v3 = vsel %vm69_vm0, %v66_v1, 0.0  ;;  %v142_v14 = vld [vmem:[%s3748_s26 + $0x18] sm:$0xff]  ;;  %v141_v15 = vld [vmem:[%s3748_s26 + $0x10] sm:$0xff]  ;;  %v140_v16 = vld [vmem:[%s3748_s26 + $0x8] sm:$0xff] }
   0xe   :  { %71 = vadd.xlane.f32.xlu0 %v70_v2  ;;  %2857 = vmatprep.subr.mxu0 %v142_v14  ;;  %v139_v17 = vld [vmem:[%s3748_s26] sm:$0xff]  ;;  %v3323_v61 = vrot.slane %v138_v56, %v390_v53 }
   0xf   :  { %2858 = vmatpush3.msra.mxu0 %v142_v14  ;;  %v2669_v25 = vld [vmem:[%s3749_s22] ss:$0 sm:$0xff] }
  0x10   :  { %2859 = vmatprep.subr.mxu0 %v141_v15  ;;  %v2670_v27 = vld [vmem:[%s3750_s2] ss:$0 sm:$0xff] }
  0x11   :  { %2860 = vmatpush3.msra.mxu0 %v141_v15  ;;  %v2671_v35 = vld [vmem:[%s3751_s27] ss:$0 sm:$0xff] }
  0x12   :  { %74 = vadd.xlane.f32.xlu0 %v73_v3  ;;  %2861 = vmatprep.subr.mxu0 %v140_v16 }
  0x13   :  { %2862 = vmatpush3.msra.mxu0 %v140_v16 }
  0x14   :  { %2863 = vmatprep.subr.mxu0 %v139_v17 }
  0x15   :  { %2864 = vmatpush3.msra.mxu0 %v139_v17 }
  0x16   :  { %2878 = vmatprep.subr.mxu0 %v3138_v34 }
  0x97   :  { %v72_v4 = vpop.xlane.xlu0 %71 }
  0x98   :  { %v77_v5 = vmul.f32 0.03125, %v72_v4 }
  0x9a   :  { %v79_v6 = vsub.f32 %v65_v0, %v77_v5 }
  0x9b   :  { %v75_v7 = vpop.xlane.xlu0 %74 }
  0x9c   :  { %v78_v8 = vmul.f32 0.03125, %v75_v7  ;;  %v81_v9 = vmul.f32 %v79_v6, %v79_v6 }
  0x9e   :  { %v80_v10 = vsub.f32 %v66_v1, %v78_v8  ;;  %v83_v11 = vsel %vm69_vm0, %v81_v9, 0.0 }
  0x9f   :  { %84 = vadd.xlane.f32.xlu1 %v83_v11 }
  0xa0   :  { %v82_v12 = vmul.f32 %v80_v10, %v80_v10 }
  0xa2   :  { %v86_v13 = vsel %vm69_vm0, %v82_v12, 0.0 }
  0xa3   :  { %87 = vadd.xlane.f32.xlu1 %v86_v13 }
 0x128   :  { %v85_v18 = vpop.xlane.xlu1 %84 }
 0x129   :  { %v89_v19 = vmul.f32 0.03125, %v85_v18 }
 0x12b   :  { %v91_v20 = vadd.f32 1e-05, %v89_v19 }
 0x12c   :  { %v88_v21 = vpop.xlane.xlu1 %87 }
 0x12d   :  { %3072 = vrsqrt.f32 %v91_v20  ;;  %v90_v22 = vmul.f32 0.03125, %v88_v21 }
 0x12f   :  { %v92_v23 = vadd.f32 1e-05, %v90_v22 }
 0x131   :  { %3074 = vrsqrt.f32 %v92_v23 }
 0x13a   :  { %v3073_v24 = vpop.eup %3072 }
 0x13b   :  { %v95_v26 = vmul.f32 %v3073_v24, %v79_v6 }
 0x13d   :  { %v103_v28 = vmul.f32 %v2669_v25, %v95_v26 }
 0x13e   :  { %v3075_v29 = vpop.eup %3074 }
 0x13f   :  { %v96_v30 = vmul.f32 %v3075_v29, %v80_v10  ;;  %v3280_v31 = vadd.f32 %v2670_v27, %v103_v28 }
 0x141   :  { %v104_v32 = vmul.f32 %v2669_v25, %v96_v30  ;;  %2865 = vmatprep.mubr.msk.f32.mxu0 %vm69_vm0, %v3280_v31 }
 0x143   :  { %v3284_v33 = vadd.f32 %v2670_v27, %v104_v32 }
 0x145   :  { %2866 = vmatmul.mubr.msk.f32.vlgmr.msra.gmra.mxu0 %vm69_vm0, %v3284_v33 }
 0x146   :  { %2880 = vmatprep.mubr.msk.f32.mxu0 %vm3139_vm1, %v3138_v34 }
 0x205   :  { %v2867_v36 = vpop.f32.mrf.mxu0 }
 0x206   :  { %v3297_v37 = vadd.f32 %v2867_v36, %v2671_v35 }
 0x207   :  { %v222_v38 = vpop.f32.mrf.mxu0 }
 0x208   :  { %v3299_v39 = vadd.f32 %v2671_v35, %v222_v38  ;;  %310 = vrot.lane.b32.xlu1 %v3297_v37, %s3140_s28 }
 0x20a   :  { %232 = vrot.lane.b32.xlu0 %v3299_v39, %s3140_s28 }
 0x27a   :  { %v311_v41 = vpop.permute.xlu1 %310 }
 0x27c   :  { %v233_v40 = vpop.permute.xlu0 %232 }
 0x27d   :  { %2869 = vmatpush3.xpose.msk.msra.mxu1 %vm234_vm2, %v233_v40 }
 0x27e   :  { %2873 = vmatprep.subr.mxu1 %v3138_v34 }
 0x280   :  { %2871 = vmatmul.mubr.msk.f32.vlgmr.msra.gmra.mxu1 %vm234_vm2, %v3299_v39 }
 0x281   :  { %2874 = vmatpush3.xpose.msk.msra.mxu1 %vm234_vm2, %v311_v41  ;;  %2875 = vmatprep.mubr.msk.f32.mxu1 %vm3139_vm1, %v3138_v34 }
 0x282   :  { %2883 = vmatprep.subr.mxu1 %v3138_v34 }
 0x284   :  { %2876 = vmatmul.mubr.msk.f32.vlgmr.msra.gmra.mxu1 %vm234_vm2, %v3297_v37 }
 0x285   :  { %2885 = vmatprep.mubr.msk.f32.mxu1 %vm3139_vm1, %v3138_v34 }
 0x340   :  { %v305_v57 = vpop.f32.mrf.mxu1 }
 0x341   :  { %v386_v58 = vmul.f32 0.25, %v305_v57 }
 0x342   :  { %v2872_v59 = vpop.f32.mrf.mxu1 }
 0x343   :  { %v398_v60 = vadd.f32 %v3320_v55, %v386_v58 }
 0x344   :  { %v382_v62 = vpop.f32.mrf.mxu1 }
 0x345   :  { %v387_v63 = vmul.f32 0.25, %v382_v62  ;;  %v401_v0 = vsel %vm400_vm3, %v398_v60, -inf }
 0x346   :  { %402 = vmax.xlane.f32.xlu1 %v401_v0  ;;  %v2877_v1 = vpop.f32.mrf.mxu1  ;;  %v922_v0 = vld [vmem:[%s3724_s6 + $0x18] sm:$0xff] }
 0x347   :  { %v399_v2 = vadd.f32 %v3323_v61, %v387_v63  ;;  %v920_v1 = vld [vmem:[%s3724_s6 + $0x8] sm:$0xff] }
 0x349   :  { %v404_v3 = vsel %vm400_vm3, %v399_v2, -inf }
 0x34a   :  { %405 = vmax.xlane.f32.xlu0 %v404_v3 }
 0x357   :  { %499 = vrot.lane.b32.xlu1 %v3297_v37, %s3142_s1 }
 0x35b   :  { %577 = vrot.lane.b32.xlu1 %v3299_v39, %s3143_s30 }
 0x35f   :  { %655 = vrot.lane.b32.xlu1 %v3297_v37, %s3143_s30 }
 0x3cf   :  { %v403_v4 = vpop.xlane.xlu1 %402 }
 0x3d0   :  { %v407_v5 = vsub.f32 %v398_v60, %v403_v4 }
 0x3d2   :  { %v409_v6 = vmul.f32 1.442695, %v407_v5 }
 0x3d3   :  { %v500_v7 = vpop.permute.xlu1 %499  ;;  %v406_v8 = vpop.xlane.xlu0 %405 }
 0x3d4   :  { %3076 = vpow2.f32 %v409_v6  ;;  %v408_v9 = vsub.f32 %v399_v2, %v406_v8  ;;  %2884 = vmatpush3.msra.mxu1 %v500_v7  ;;  %v919_v2 = vld [vmem:[%s3724_s6] sm:$0xff] }
 0x3d5   :  { %2893 = vmatprep.subr.mxu1 %v3138_v34 }
 0x3d6   :  { %v411_v10 = vmul.f32 1.442695, %v408_v9 }
 0x3d7   :  { %v578_v15 = vpop.permute.xlu1 %577 }
 0x3d8   :  { %3078 = vpow2.f32 %v411_v10 }
 0x3db   :  { %v656_v16 = vpop.permute.xlu1 %655 }
 0x3e1   :  { %v3077_v11 = vpop.eup %3076 }
 0x3e2   :  { %v413_v12 = vsel %vm400_vm3, %v3077_v11, 0.0 }
 0x3e3   :  { %414 = vadd.xlane.f32.xlu0 %v413_v12 }
 0x3e5   :  { %v3079_v13 = vpop.eup %3078 }
 0x3e6   :  { %v416_v14 = vsel %vm400_vm3, %v3079_v13, 0.0 }
 0x3e7   :  { %417 = vadd.xlane.f32.xlu1 %v416_v14 }
 0x3f8   :  { %653 = vrot.lane.b32.xlu1 %v3297_v37, %s3144_s0 }
 0x3f9   :  { %423 = vrot.lane.b32.xlu0 %v3299_v39, %s3142_s1 }
 0x3fd   :  { %575 = vrot.lane.b32.xlu0 %v3299_v39, %s3144_s0 }
 0x46c   :  { %v415_v17 = vpop.xlane.xlu0 %414 }
 0x46d   :  { %3080 = vrcp.f32 %v415_v17 }
 0x470   :  { %v418_v18 = vpop.xlane.xlu1 %417  ;;  %v424_v19 = vpop.permute.xlu0 %423 }
 0x471   :  { %3082 = vrcp.f32 %v418_v18  ;;  %2879 = vmatpush3.msra.mxu0 %v424_v19 }
 0x472   :  { %2888 = vmatprep.subr.mxu0 %v3138_v34 }
 0x474   :  { %v576_v24 = vpop.permute.xlu0 %575  ;;  %v654_v25 = vpop.permute.xlu1 %653 }
 0x47a   :  { %v3081_v20 = vpop.eup %3080 }
 0x47b   :  { %v421_v21 = vmul.f32 %v3081_v20, %v3077_v11  ;;  %v2686_v11 = vld [vmem:[%s3725_s7] ss:$0 sm:$0xff] }
 0x47d   :  { %2881 = vmatmul.mubr.msk.f32.vlgmr.msra.gmra.mxu0 %vm400_vm3, %v421_v21 }
 0x47e   :  { %v3083_v22 = vpop.eup %3082  ;;  %2889 = vmatpush3.xpose.msk.msra.mxu0 %vm234_vm2, %v578_v15  ;;  %2890 = vmatprep.mubr.msk.f32.mxu0 %vm3139_vm1, %v3138_v34 }
 0x47f   :  { %v422_v23 = vmul.f32 %v3083_v22, %v3079_v13  ;;  %2898 = vmatprep.subr.mxu0 %v3138_v34 }
 0x481   :  { %2886 = vmatmul.mubr.msk.f32.vlgmr.msra.gmra.mxu1 %vm400_vm3, %v422_v23  ;;  %2891 = vmatmul.mubr.msk.f32.vlgmr.msra.gmra.mxu0 %vm234_vm2, %v576_v24 }
 0x482   :  { %2894 = vmatpush3.xpose.msk.msra.mxu1 %vm234_vm2, %v656_v16  ;;  %2895 = vmatprep.mubr.msk.f32.mxu1 %vm3139_vm1, %v3138_v34 }
 0x483   :  { %2903 = vmatprep.subr.mxu1 %v3138_v34  ;;  %2900 = vmatprep.mubr.msk.f32.mxu0 %vm3139_vm1, %v3138_v34 }
 0x485   :  { %2896 = vmatmul.mubr.msk.f32.vlgmr.msra.gmra.mxu1 %vm234_vm2, %v654_v25 }
 0x486   :  { %2905 = vmatprep.mubr.msk.f32.mxu1 %vm3139_vm1, %v3138_v34 }
 0x53d   :  { %v3360_v26 = vpop.f32.mrf.mxu0 }
 0x53f   :  { %v2882_v27 = vpop.f32.mrf.mxu0 }
 0x541   :  { %v3362_v28 = vpop.f32.mrf.mxu1  ;;  %v649_v29 = vpop.f32.mrf.mxu0 }
 0x542   :  { %v731_v30 = vmul.f32 0.25, %v649_v29  ;;  %v1059_v29 = vld [vmem:[%s3726_s10 + $0x10] sm:$0xff] }
 0x543   :  { %v2887_v32 = vpop.f32.mrf.mxu1  ;;  %v2892_v35 = vpop.f32.mrf.mxu0 }
 0x544   :  { %v733_v36 = vadd.f32 %v731_v30, %v3320_v55  ;;  %v1058_v30 = vld [vmem:[%s3726_s10 + $0x8] sm:$0xff]  ;;  %v1057_v32 = vld [vmem:[%s3726_s10] sm:$0xff] }
 0x545   :  { %v727_v38 = vpop.f32.mrf.mxu1 }
 0x546   :  { %v732_v40 = vmul.f32 0.25, %v727_v38  ;;  %v735_v41 = vsel %vm400_vm3, %v733_v36, -inf }
 0x547   :  { %736 = vmax.xlane.f32.xlu0 %v735_v41  ;;  %v2897_v42 = vpop.f32.mrf.mxu1 }
 0x548   :  { %v734_v43 = vadd.f32 %v732_v40, %v3323_v61 }
 0x54a   :  { %v738_v44 = vsel %vm400_vm3, %v734_v43, -inf }
 0x54b   :  { %739 = vmax.xlane.f32.xlu1 %v738_v44  ;;  %v2689_v44 = vld [vmem:[%s3727_s8] ss:$0 sm:$0xff] }
 0x55c   :  { %833 = vrot.lane.b32.xlu1 %v3297_v37, %s3145_s21 }
 0x5d0   :  { %v737_v45 = vpop.xlane.xlu0 %736 }
 0x5d1   :  { %v741_v46 = vsub.f32 %v733_v36, %v737_v45 }
 0x5d3   :  { %v743_v47 = vmul.f32 1.442695, %v741_v46  ;;  %v2690_v46 = vld [vmem:[%s3728_s9] ss:$0 sm:$0xff] }
 0x5d4   :  { %v740_v48 = vpop.xlane.xlu1 %739 }
 0x5d5   :  { %3084 = vpow2.f32 %v743_v47  ;;  %v742_v49 = vsub.f32 %v734_v43, %v740_v48 }
 0x5d7   :  { %v745_v50 = vmul.f32 1.442695, %v742_v49 }
 0x5d8   :  { %v834_v51 = vpop.permute.xlu1 %833 }
 0x5d9   :  { %3086 = vpow2.f32 %v745_v50  ;;  %2904 = vmatpush3.msra.mxu1 %v834_v51 }
 0x5e2   :  { %v3085_v52 = vpop.eup %3084 }
 0x5e3   :  { %v747_v53 = vsel %vm400_vm3, %v3085_v52, 0.0 }
 0x5e4   :  { %748 = vadd.xlane.f32.xlu0 %v747_v53  ;;  %v1174_v53 = vld [vmem:[%s3729_s12 + $0x38] sm:$0xff] }
 0x5e6   :  { %v3087_v54 = vpop.eup %3086 }
 0x5e7   :  { %v750_v56 = vsel %vm400_vm3, %v3087_v54, 0.0 }
 0x5e8   :  { %751 = vadd.xlane.f32.xlu0 %v750_v56  ;;  %v1172_v56 = vld [vmem:[%s3729_s12 + $0x28] sm:$0xff] }
 0x5fe   :  { %757 = vrot.lane.b32.xlu0 %v3299_v39, %s3145_s21  ;;  %v921_v39 = vld [vmem:[%s3724_s6 + $0x10] sm:$0xff] }
 0x66d   :  { %v749_v37 = vpop.xlane.xlu0 %748 }
 0x66e   :  { %3088 = vrcp.f32 %v749_v37  ;;  %v1171_v37 = vld [vmem:[%s3729_s12 + $0x20] sm:$0xff] }
 0x671   :  { %v752_v57 = vpop.xlane.xlu0 %751 }
 0x672   :  { %3090 = vrcp.f32 %v752_v57  ;;  %v1170_v57 = vld [vmem:[%s3729_s12 + $0x18] sm:$0xff] }
 0x675   :  { %v758_v58 = vpop.permute.xlu0 %757 }
 0x676   :  { %2899 = vmatpush3.msra.mxu0 %v758_v58  ;;  %v1169_v58 = vld [vmem:[%s3729_s12 + $0x10] sm:$0xff] }
 0x677   :  { %2908 = vmatprep.subr.mxu0 %v922_v0 }
 0x67b   :  { %v3089_v59 = vpop.eup %3088 }
 0x67c   :  { %v755_v60 = vmul.f32 %v3089_v59, %v3085_v52  ;;  %v1168_v59 = vld [vmem:[%s3729_s12 + $0x8] sm:$0xff] }
 0x67e   :  { %2901 = vmatmul.mubr.msk.f32.vlgmr.msra.gmra.mxu0 %vm400_vm3, %v755_v60  ;;  %v1167_v60 = vld [vmem:[%s3729_s12] sm:$0xff] }
 0x67f   :  { %v3091_v62 = vpop.eup %3090  ;;  %2909 = vmatpush3.msra.mxu0 %v922_v0 }
 0x680   :  { %v756_v63 = vmul.f32 %v3091_v62, %v3087_v54  ;;  %2910 = vmatprep.subr.mxu0 %v921_v39  ;;  %v1173_v54 = vld [vmem:[%s3729_s12 + $0x30] sm:$0xff]  ;;  %v2691_v62 = vld [vmem:[%s3730_s11] ss:$0 sm:$0xff] }
 0x681   :  { %2911 = vmatpush3.msra.mxu0 %v921_v39 }
 0x682   :  { %2906 = vmatmul.mubr.msk.f32.vlgmr.msra.gmra.mxu1 %vm400_vm3, %v756_v63  ;;  %2912 = vmatprep.subr.mxu0 %v920_v1 }
 0x683   :  { %2913 = vmatpush3.msra.mxu0 %v920_v1 }
 0x684   :  { %2914 = vmatprep.subr.mxu0 %v919_v2 }
 0x685   :  { %2915 = vmatpush3.msra.mxu0 %v919_v2 }
 0x686   :  { %2930 = vmatprep.subr.mxu0 %v1174_v53 }
 0x73e   :  { %v829_v3 = vpop.f32.mrf.mxu0 }
 0x73f   :  { %911 = vrot.lane.b32.xlu1 %v829_v3, %s3146_s29 }
 0x740   :  { %v2902_v4 = vpop.f32.mrf.mxu0 }
 0x742   :  { %v905_v5 = vpop.f32.mrf.mxu1 }
 0x743   :  { %913 = vrot.lane.b32.xlu1 %v905_v5, %s3146_s29 }
 0x744   :  { %v2907_v6 = vpop.f32.mrf.mxu1 }
 0x7b1   :  { %v912_v7 = vpop.permute.xlu1 %911 }
 0x7b2   :  { %v917_v8 = vsel %vm234_vm2, %v3360_v26, %v912_v7 }
 0x7b3   :  { %2916 = vmatprep.mubr.msk.f32.mxu0 %vm69_vm0, %v917_v8 }
 0x7b5   :  { %v914_v9 = vpop.permute.xlu1 %913 }
 0x7b6   :  { %v918_v10 = vsel %vm234_vm2, %v3362_v28, %v914_v9 }
 0x7b7   :  { %2917 = vmatmul.mubr.msk.f32.vlgmr.msra.gmra.mxu0 %vm69_vm0, %v918_v10 }
 0x7b8   :  { %2931 = vmatpush3.msra.mxu0 %v1174_v53  ;;  %v2697_v53 = vld [vmem:[%s3732_s14] ss:$0 sm:$0xff] }
 0x7b9   :  { %2932 = vmatprep.subr.mxu0 %v1173_v54 }
 0x7ba   :  { %2933 = vmatpush3.msra.mxu0 %v1173_v54 }
 0x7bb   :  { %2934 = vmatprep.subr.mxu0 %v1172_v56 }
 0x7bc   :  { %2935 = vmatpush3.msra.mxu0 %v1172_v56 }
 0x7bd   :  { %2936 = vmatprep.subr.mxu0 %v1171_v37 }
 0x7be   :  { %2937 = vmatpush3.msra.mxu0 %v1171_v37 }
 0x7bf   :  { %2938 = vmatprep.subr.mxu0 %v1170_v57 }
 0x7c0   :  { %2939 = vmatpush3.msra.mxu0 %v1170_v57 }
 0x7c1   :  { %2940 = vmatprep.subr.mxu0 %v1169_v58 }
 0x7c2   :  { %2941 = vmatpush3.msra.mxu0 %v1169_v58  ;;  %v2698_v58 = vld [vmem:[%s3733_s15] ss:$0 sm:$0xff] }
 0x7c3   :  { %2942 = vmatprep.subr.mxu0 %v1168_v59 }
 0x7c4   :  { %2943 = vmatpush3.msra.mxu0 %v1168_v59 }
 0x7c5   :  { %2944 = vmatprep.subr.mxu0 %v1167_v60 }
 0x7c6   :  { %2945 = vmatpush3.msra.mxu0 %v1167_v60 }
 0x7c7   :  { %2970 = vmatprep.subr.mxu0 %v3138_v34 }
 0x877   :  { %v2918_v12 = vpop.f32.mrf.mxu0 }
 0x878   :  { %v1008_v13 = vadd.f32 %v2918_v12, %v2686_v11 }
 0x879   :  { %v1002_v14 = vpop.f32.mrf.mxu0 }
 0x87a   :  { %v1003_v15 = vadd.f32 %v2686_v11, %v1002_v14  ;;  %v1012_v16 = vadd.f32 %v1008_v13, %v3284_v33 }
 0x87c   :  { %v1018_v17 = vsel %vm69_vm0, %v1012_v16, 0.0  ;;  %v1011_v18 = vadd.f32 %v1003_v15, %v3280_v31  ;;  %v1060_v31 = vld [vmem:[%s3726_s10 + $0x18] sm:$0xff] }
 0x87d   :  { %1019 = vadd.xlane.f32.xlu1 %v1018_v17  ;;  %2919 = vmatprep.subr.mxu1 %v1060_v31 }
 0x87e   :  { %v1015_v19 = vsel %vm69_vm0, %v1011_v18, 0.0  ;;  %2920 = vmatpush3.msra.mxu1 %v1060_v31 }
 0x87f   :  { %1016 = vadd.xlane.f32.xlu0 %v1015_v19  ;;  %2921 = vmatprep.subr.mxu1 %v1059_v29 }
 0x880   :  { %2922 = vmatpush3.msra.mxu1 %v1059_v29 }
 0x881   :  { %2923 = vmatprep.subr.mxu1 %v1058_v30 }
 0x882   :  { %2924 = vmatpush3.msra.mxu1 %v1058_v30 }
 0x883   :  { %2925 = vmatprep.subr.mxu1 %v1057_v32 }
 0x884   :  { %2926 = vmatpush3.msra.mxu1 %v1057_v32 }
 0x906   :  { %v1020_v20 = vpop.xlane.xlu1 %1019 }
 0x907   :  { %v1022_v21 = vmul.f32 0.03125, %v1020_v20  ;;  %v2694_v20 = vld [vmem:[%s3731_s13] ss:$0 sm:$0xff] }
 0x908   :  { %v1017_v22 = vpop.xlane.xlu0 %1016 }
 0x909   :  { %v1021_v23 = vmul.f32 0.03125, %v1017_v22  ;;  %v1024_v24 = vsub.f32 %v1012_v16, %v1022_v21 }
 0x90b   :  { %v1023_v25 = vsub.f32 %v1011_v18, %v1021_v23  ;;  %v1026_v28 = vmul.f32 %v1024_v24, %v1024_v24 }
 0x90d   :  { %v1025_v26 = vmul.f32 %v1023_v25, %v1023_v25  ;;  %v1030_v33 = vsel %vm69_vm0, %v1026_v28, 0.0 }
 0x90f   :  { %v1027_v27 = vsel %vm69_vm0, %v1025_v26, 0.0 }
 0x910   :  { %1028 = vadd.xlane.f32.xlu0 %v1027_v27 }
 0x914   :  { %1031 = vadd.xlane.f32.xlu0 %v1030_v33 }
 0x999   :  { %v1029_v35 = vpop.xlane.xlu0 %1028 }
 0x99a   :  { %v1033_v36 = vmul.f32 0.03125, %v1029_v35 }
 0x99c   :  { %v1035_v38 = vadd.f32 1e-05, %v1033_v36 }
 0x99d   :  { %v1032_v40 = vpop.xlane.xlu0 %1031 }
 0x99e   :  { %3092 = vrsqrt.f32 %v1035_v38  ;;  %v1034_v41 = vmul.f32 0.03125, %v1032_v40 }
 0x9a0   :  { %v1036_v42 = vadd.f32 1e-05, %v1034_v41 }
 0x9a2   :  { %3094 = vrsqrt.f32 %v1036_v42  ;;  %v2702_v42 = vld [vmem:[%s3748_s26 + $0x38] sm:$0xff] }
 0x9a3   :  { %2949 = vmatprep.subr.mxu1 %v2702_v42 }
 0x9ab   :  { %v3093_v43 = vpop.eup %3092 }
 0x9ac   :  { %v1039_v45 = vmul.f32 %v3093_v43, %v1023_v25  ;;  %v2701_v43 = vld [vmem:[%s3748_s26 + $0x30] sm:$0xff] }
 0x9ae   :  { %v1047_v47 = vmul.f32 %v2689_v44, %v1039_v45  ;;  %v2699_v45 = vld [vmem:[%s3748_s26 + $0x20] sm:$0xff] }
 0x9af   :  { %v3095_v48 = vpop.eup %3094 }
 0x9b0   :  { %v1040_v49 = vmul.f32 %v3095_v48, %v1024_v24  ;;  %v3423_v50 = vadd.f32 %v2690_v46, %v1047_v47 }
 0x9b2   :  { %v1048_v51 = vmul.f32 %v2689_v44, %v1040_v49  ;;  %2927 = vmatprep.mubr.msk.f32.mxu1 %vm69_vm0, %v3423_v50  ;;  %v2700_v44 = vld [vmem:[%s3748_s26 + $0x28] sm:$0xff] }
 0x9b4   :  { %v3427_v52 = vadd.f32 %v2690_v46, %v1048_v51 }
 0x9b6   :  { %2928 = vmatmul.mubr.msk.f32.vlgmr.msra.gmra.mxu1 %vm69_vm0, %v3427_v52 }
 0x9b7   :  { %2950 = vmatpush3.msra.mxu1 %v2702_v42 }
 0x9b8   :  { %2951 = vmatprep.subr.mxu1 %v2701_v43 }
 0x9b9   :  { %2952 = vmatpush3.msra.mxu1 %v2701_v43 }
 0x9ba   :  { %2953 = vmatprep.subr.mxu1 %v2700_v44 }
 0x9bb   :  { %2954 = vmatpush3.msra.mxu1 %v2700_v44 }
 0x9bc   :  { %2955 = vmatprep.subr.mxu1 %v2699_v45 }
 0x9bd   :  { %2956 = vmatpush3.msra.mxu1 %v2699_v45 }
 0x9be   :  { %2960 = vmatprep.subr.mxu1 %v3138_v34 }
 0xa76   :  { %v2929_v63 = vpop.f32.mrf.mxu1 }
 0xa77   :  { %v1146_v0 = vadd.f32 %v2929_v63, %v2691_v62  ;;  %v2704_v63 = vld [vmem:[%s3751_s27 + $0x1] ss:$0 sm:$0xff] }
 0xa78   :  { %v1140_v39 = vpop.f32.mrf.mxu1 }
 0xa79   :  { %v1152_v1 = vmul.f32 0.044715, %v1146_v0  ;;  %v1141_v2 = vadd.f32 %v2691_v62, %v1140_v39  ;;  %v1150_v17 = vmul.f32 0.5, %v1146_v0 }
 0xa7b   :  { %v1154_v3 = vmul.f32 %v1152_v1, %v1146_v0  ;;  %v1151_v4 = vmul.f32 0.044715, %v1141_v2  ;;  %v1149_v15 = vmul.f32 0.5, %v1141_v2 }
 0xa7d   :  { %v1156_v5 = vmul.f32 %v1154_v3, %v1146_v0  ;;  %v1153_v6 = vmul.f32 %v1151_v4, %v1141_v2 }
 0xa7f   :  { %v1158_v7 = vadd.f32 %v1156_v5, %v1146_v0  ;;  %v1155_v8 = vmul.f32 %v1153_v6, %v1141_v2 }
 0xa81   :  { %v1160_v9 = vmul.f32 0.7978846, %v1158_v7  ;;  %v1157_v10 = vadd.f32 %v1155_v8, %v1141_v2 }
 0xa83   :  { %3096 = vtanh.f32 %v1160_v9  ;;  %v1159_v11 = vmul.f32 0.7978846, %v1157_v10 }
 0xa85   :  { %3098 = vtanh.f32 %v1159_v11 }
 0xa90   :  { %v3097_v12 = vpop.eup %3096 }
 0xa91   :  { %v1164_v14 = vadd.f32 1.0, %v3097_v12 }
 0xa92   :  { %v3099_v13 = vpop.eup %3098 }
 0xa93   :  { %v1163_v16 = vadd.f32 1.0, %v3099_v13  ;;  %v1166_v19 = vmul.f32 %v1164_v14, %v1150_v17 }
 0xa95   :  { %v1165_v18 = vmul.f32 %v1163_v16, %v1149_v15 }
 0xa97   :  { %2946 = vmatprep.mubr.msk.f32.mxu0 %vm1182_vm4, %v1165_v18 }
 0xa98   :  { %2947 = vmatmul.mubr.msk.f32.vlgmr.msra.gmra.mxu0 %vm1182_vm4, %v1166_v19 }
 0xa99   :  { %2972 = vmatprep.mubr.msk.f32.mxu0 %vm3139_vm1, %v3138_v34 }
 0xb58   :  { %v2948_v21 = vpop.f32.mrf.mxu0 }
 0xb59   :  { %v1261_v22 = vadd.f32 %v2948_v21, %v2694_v20 }
 0xb5a   :  { %v1255_v23 = vpop.f32.mrf.mxu0 }
 0xb5b   :  { %v1256_v24 = vadd.f32 %v2694_v20, %v1255_v23  ;;  %v1265_v25 = vadd.f32 %v1261_v22, %v3427_v52 }
 0xb5d   :  { %v1271_v26 = vsel %vm69_vm0, %v1265_v25, 0.0  ;;  %v1264_v27 = vadd.f32 %v1256_v24, %v3423_v50 }
 0xb5e   :  { %1272 = vadd.xlane.f32.xlu1 %v1271_v26 }
 0xb5f   :  { %v1268_v28 = vsel %vm69_vm0, %v1264_v27, 0.0 }
 0xb60   :  { %1269 = vadd.xlane.f32.xlu0 %v1268_v28 }
 0xbe7   :  { %v1273_v33 = vpop.xlane.xlu1 %1272 }
 0xbe8   :  { %v1275_v31 = vmul.f32 0.03125, %v1273_v33 }
 0xbe9   :  { %v1270_v29 = vpop.xlane.xlu0 %1269 }
 0xbea   :  { %v1277_v30 = vsub.f32 %v1265_v25, %v1275_v31  ;;  %v1274_v32 = vmul.f32 0.03125, %v1270_v29 }
 0xbec   :  { %v1276_v35 = vsub.f32 %v1264_v27, %v1274_v32  ;;  %v1279_v36 = vmul.f32 %v1277_v30, %v1277_v30 }
 0xbee   :  { %v1283_v38 = vsel %vm69_vm0, %v1279_v36, 0.0  ;;  %v1278_v40 = vmul.f32 %v1276_v35, %v1276_v35 }
 0xbef   :  { %1284 = vadd.xlane.f32.xlu1 %v1283_v38 }
 0xbf0   :  { %v1280_v41 = vsel %vm69_vm0, %v1278_v40, 0.0 }
 0xbf1   :  { %1281 = vadd.xlane.f32.xlu0 %v1280_v41 }
 0xc78   :  { %v1285_v46 = vpop.xlane.xlu1 %1284 }
 0xc79   :  { %v1287_v47 = vmul.f32 0.03125, %v1285_v46 }
 0xc7a   :  { %v1282_v48 = vpop.xlane.xlu0 %1281 }
 0xc7b   :  { %v1289_v49 = vadd.f32 1e-05, %v1287_v47  ;;  %v1286_v50 = vmul.f32 0.03125, %v1282_v48 }
 0xc7d   :  { %3100 = vrsqrt.f32 %v1289_v49  ;;  %v1288_v51 = vadd.f32 1e-05, %v1286_v50 }
 0xc7f   :  { %3102 = vrsqrt.f32 %v1288_v51 }
 0xc8a   :  { %v3101_v52 = vpop.eup %3100 }
 0xc8b   :  { %v1293_v54 = vmul.f32 %v3101_v52, %v1277_v30 }
 0xc8c   :  { %v3103_v56 = vpop.eup %3102 }
 0xc8d   :  { %v1292_v37 = vmul.f32 %v3103_v56, %v1276_v35  ;;  %v1301_v57 = vmul.f32 %v2697_v53, %v1293_v54 }
 0xc8f   :  { %v1300_v59 = vmul.f32 %v2697_v53, %v1292_v37  ;;  %v3493_v62 = vadd.f32 %v2698_v58, %v1301_v57 }
 0xc91   :  { %v3491_v60 = vadd.f32 %v2698_v58, %v1300_v59 }
 0xc93   :  { %2957 = vmatprep.mubr.msk.f32.mxu1 %vm69_vm0, %v3491_v60 }
 0xc94   :  { %2958 = vmatmul.mubr.msk.f32.vlgmr.msra.gmra.mxu1 %vm69_vm0, %v3493_v62 }
 0xc95   :  { %2962 = vmatprep.mubr.msk.f32.mxu1 %vm3139_vm1, %v3138_v34 }
 0xd54   :  { %v2959_v0 = vpop.f32.mrf.mxu1 }
 0xd55   :  { %v3504_v39 = vadd.f32 %v2959_v0, %v2704_v63 }
 0xd56   :  { %v1395_v1 = vpop.f32.mrf.mxu1 }
 0xd57   :  { %v3506_v2 = vadd.f32 %v2704_v63, %v1395_v1  ;;  %1482 = vrot.lane.b32.xlu1 %v3504_v39, %s3140_s28 }
 0xd59   :  { %1405 = vrot.lane.b32.xlu0 %v3506_v2, %s3140_s28 }
 0xdc9   :  { %v1483_v4 = vpop.permute.xlu1 %1482 }
 0xdcb   :  { %v1406_v3 = vpop.permute.xlu0 %1405 }
 0xdcc   :  { %2961 = vmatpush3.xpose.msk.msra.mxu1 %vm234_vm2, %v1406_v3 }
 0xdcd   :  { %2965 = vmatprep.subr.mxu1 %v3138_v34 }
 0xdcf   :  { %2963 = vmatmul.mubr.msk.f32.vlgmr.msra.gmra.mxu1 %vm234_vm2, %v3506_v2 }
 0xdd0   :  { %2966 = vmatpush3.xpose.msk.msra.mxu1 %vm234_vm2, %v1483_v4  ;;  %2967 = vmatprep.mubr.msk.f32.mxu1 %vm3139_vm1, %v3138_v34 }
 0xdd1   :  { %2975 = vmatprep.subr.mxu1 %v3138_v34 }
 0xdd3   :  { %2968 = vmatmul.mubr.msk.f32.vlgmr.msra.gmra.mxu1 %vm234_vm2, %v3504_v39 }
 0xdd4   :  { %2977 = vmatprep.mubr.msk.f32.mxu1 %vm3139_vm1, %v3138_v34 }
 0xe8f   :  { %v1477_v5 = vpop.f32.mrf.mxu1 }
 0xe90   :  { %v1558_v6 = vmul.f32 0.25, %v1477_v5 }
 0xe91   :  { %v2964_v7 = vpop.f32.mrf.mxu1 }
 0xe92   :  { %v1560_v8 = vadd.f32 %v1558_v6, %v3320_v55 }
 0xe93   :  { %v1554_v9 = vpop.f32.mrf.mxu1 }
 0xe94   :  { %v1559_v10 = vmul.f32 0.25, %v1554_v9  ;;  %v1562_v11 = vsel %vm400_vm3, %v1560_v8, -inf  ;;  %v2722_v9 = vld [vmem:[%s3724_s6 + $0x38] sm:$0xff] }
 0xe95   :  { %1563 = vmax.xlane.f32.xlu1 %v1562_v11  ;;  %v2969_v12 = vpop.f32.mrf.mxu1  ;;  %v2719_v11 = vld [vmem:[%s3724_s6 + $0x20] sm:$0xff] }
 0xe96   :  { %v1561_v13 = vadd.f32 %v1559_v10, %v3323_v61  ;;  %v2720_v10 = vld [vmem:[%s3724_s6 + $0x28] sm:$0xff] }
 0xe98   :  { %v1565_v14 = vsel %vm400_vm3, %v1561_v13, -inf }
 0xe99   :  { %1566 = vmax.xlane.f32.xlu0 %v1565_v14 }
 0xea6   :  { %1660 = vrot.lane.b32.xlu1 %v3504_v39, %s3142_s1 }
 0xeaa   :  { %1738 = vrot.lane.b32.xlu1 %v3506_v2, %s3143_s30 }
 0xeae   :  { %1816 = vrot.lane.b32.xlu1 %v3504_v39, %s3143_s30 }
 0xf1e   :  { %v1564_v15 = vpop.xlane.xlu1 %1563 }
 0xf1f   :  { %v1568_v16 = vsub.f32 %v1560_v8, %v1564_v15 }
 0xf21   :  { %v1570_v17 = vmul.f32 1.442695, %v1568_v16 }
 0xf22   :  { %v1661_v18 = vpop.permute.xlu1 %1660  ;;  %v1567_v19 = vpop.xlane.xlu0 %1566 }
 0xf23   :  { %3104 = vpow2.f32 %v1570_v17  ;;  %v1569_v20 = vsub.f32 %v1561_v13, %v1567_v19  ;;  %2976 = vmatpush3.msra.mxu1 %v1661_v18 }
 0xf24   :  { %2985 = vmatprep.subr.mxu1 %v3138_v34 }
 0xf25   :  { %v1572_v21 = vmul.f32 1.442695, %v1569_v20  ;;  %v2724_v20 = vld [vmem:[%s3725_s7 + $0x1] ss:$0 sm:$0xff] }
 0xf26   :  { %v1739_v26 = vpop.permute.xlu1 %1738 }
 0xf27   :  { %3106 = vpow2.f32 %v1572_v21 }
 0xf2a   :  { %v1817_v27 = vpop.permute.xlu1 %1816 }
 0xf30   :  { %v3105_v22 = vpop.eup %3104 }
 0xf31   :  { %v1574_v23 = vsel %vm400_vm3, %v3105_v22, 0.0 }
 0xf32   :  { %1575 = vadd.xlane.f32.xlu0 %v1574_v23 }
 0xf34   :  { %v3107_v24 = vpop.eup %3106 }
 0xf35   :  { %v1577_v25 = vsel %vm400_vm3, %v3107_v24, 0.0 }
 0xf36   :  { %1578 = vadd.xlane.f32.xlu1 %v1577_v25 }
 0xf47   :  { %1814 = vrot.lane.b32.xlu1 %v3504_v39, %s3144_s0 }
 0xf48   :  { %1584 = vrot.lane.b32.xlu0 %v3506_v2, %s3142_s1 }
 0xf4c   :  { %1736 = vrot.lane.b32.xlu0 %v3506_v2, %s3144_s0 }
 0xfbb   :  { %v1576_v28 = vpop.xlane.xlu0 %1575 }
 0xfbc   :  { %3108 = vrcp.f32 %v1576_v28 }
 0xfbf   :  { %v1579_v33 = vpop.xlane.xlu1 %1578  ;;  %v1585_v31 = vpop.permute.xlu0 %1584 }
 0xfc0   :  { %3110 = vrcp.f32 %v1579_v33  ;;  %2971 = vmatpush3.msra.mxu0 %v1585_v31 }
 0xfc1   :  { %2980 = vmatprep.subr.mxu0 %v3138_v34 }
 0xfc3   :  { %v1737_v36 = vpop.permute.xlu0 %1736  ;;  %v1815_v38 = vpop.permute.xlu1 %1814 }
 0xfc9   :  { %v3109_v29 = vpop.eup %3108 }
 0xfca   :  { %v1582_v30 = vmul.f32 %v3109_v29, %v3105_v22 }
 0xfcc   :  { %2973 = vmatmul.mubr.msk.f32.vlgmr.msra.gmra.mxu0 %vm400_vm3, %v1582_v30 }
 0xfcd   :  { %v3111_v32 = vpop.eup %3110  ;;  %2981 = vmatpush3.xpose.msk.msra.mxu0 %vm234_vm2, %v1739_v26  ;;  %2982 = vmatprep.mubr.msk.f32.mxu0 %vm3139_vm1, %v3138_v34 }
 0xfce   :  { %v1583_v35 = vmul.f32 %v3111_v32, %v3107_v24  ;;  %2990 = vmatprep.subr.mxu0 %v3138_v34 }
 0xfd0   :  { %2978 = vmatmul.mubr.msk.f32.vlgmr.msra.gmra.mxu1 %vm400_vm3, %v1583_v35  ;;  %2983 = vmatmul.mubr.msk.f32.vlgmr.msra.gmra.mxu0 %vm234_vm2, %v1737_v36 }
 0xfd1   :  { %2986 = vmatpush3.xpose.msk.msra.mxu1 %vm234_vm2, %v1817_v27  ;;  %2987 = vmatprep.mubr.msk.f32.mxu1 %vm3139_vm1, %v3138_v34 }
 0xfd2   :  { %2995 = vmatprep.subr.mxu1 %v3138_v34  ;;  %2992 = vmatprep.mubr.msk.f32.mxu0 %vm3139_vm1, %v3138_v34 }
 0xfd4   :  { %2988 = vmatmul.mubr.msk.f32.vlgmr.msra.gmra.mxu1 %vm234_vm2, %v1815_v38 }
 0xfd5   :  { %2997 = vmatprep.mubr.msk.f32.mxu1 %vm3139_vm1, %v3138_v34 }
0x108c   :  { %v3560_v40 = vpop.f32.mrf.mxu0 }
0x108e   :  { %v2974_v41 = vpop.f32.mrf.mxu0 }
0x108f   :  { %v2733_v41 = vld [vmem:[%s3726_s10 + $0x30] sm:$0xff] }
0x1090   :  { %v3562_v42 = vpop.f32.mrf.mxu1  ;;  %v1810_v43 = vpop.f32.mrf.mxu0 }
0x1091   :  { %v1892_v44 = vmul.f32 0.25, %v1810_v43  ;;  %v2731_v43 = vld [vmem:[%s3726_s10 + $0x20] sm:$0xff] }
0x1092   :  { %v2979_v45 = vpop.f32.mrf.mxu1  ;;  %v2984_v46 = vpop.f32.mrf.mxu0 }
0x1093   :  { %v1894_v47 = vadd.f32 %v1892_v44, %v3320_v55 }
0x1094   :  { %v1888_v48 = vpop.f32.mrf.mxu1 }
0x1095   :  { %v1893_v49 = vmul.f32 0.25, %v1888_v48  ;;  %v1896_v50 = vsel %vm400_vm3, %v1894_v47, -inf }
0x1096   :  { %1897 = vmax.xlane.f32.xlu0 %v1896_v50  ;;  %v2989_v51 = vpop.f32.mrf.mxu1 }
0x1097   :  { %v1895_v52 = vadd.f32 %v1893_v49, %v3323_v61  ;;  %v2729_v51 = vld [vmem:[%s3727_s8 + $0x1] ss:$0 sm:$0xff] }
0x1099   :  { %v1899_v53 = vsel %vm400_vm3, %v1895_v52, -inf }
0x109a   :  { %1900 = vmax.xlane.f32.xlu1 %v1899_v53  ;;  %v2730_v53 = vld [vmem:[%s3728_s9 + $0x1] ss:$0 sm:$0xff] }
0x10ab   :  { %1994 = vrot.lane.b32.xlu1 %v3504_v39, %s3145_s21 }
0x111f   :  { %v1898_v54 = vpop.xlane.xlu0 %1897 }
0x1120   :  { %v1902_v56 = vsub.f32 %v1894_v47, %v1898_v54 }
0x1122   :  { %v1904_v37 = vmul.f32 1.442695, %v1902_v56 }
0x1123   :  { %v1901_v57 = vpop.xlane.xlu1 %1900 }
0x1124   :  { %3112 = vpow2.f32 %v1904_v37  ;;  %v1903_v55 = vsub.f32 %v1895_v52, %v1901_v57 }
0x1126   :  { %v1906_v58 = vmul.f32 1.442695, %v1903_v55 }
0x1127   :  { %v1995_v59 = vpop.permute.xlu1 %1994 }
0x1128   :  { %3114 = vpow2.f32 %v1906_v58  ;;  %2996 = vmatpush3.msra.mxu1 %v1995_v59  ;;  %v2746_v59 = vld [vmem:[%s3729_s12 + $0x78] sm:$0xff] }
0x1131   :  { %v3113_v63 = vpop.eup %3112 }
0x1132   :  { %v1908_v0 = vsel %vm400_vm3, %v3113_v63, 0.0 }
0x1133   :  { %1909 = vadd.xlane.f32.xlu0 %v1908_v0  ;;  %v2744_v0 = vld [vmem:[%s3729_s12 + $0x68] sm:$0xff] }
0x1135   :  { %v3115_v61 = vpop.eup %3114 }
0x1136   :  { %v1911_v1 = vsel %vm400_vm3, %v3115_v61, 0.0 }
0x1137   :  { %1912 = vadd.xlane.f32.xlu0 %v1911_v1  ;;  %v2742_v1 = vld [vmem:[%s3729_s12 + $0x58] sm:$0xff] }
0x114d   :  { %1918 = vrot.lane.b32.xlu0 %v3506_v2, %s3145_s21  ;;  %v2721_v2 = vld [vmem:[%s3724_s6 + $0x30] sm:$0xff] }
0x11bc   :  { %v1910_v39 = vpop.xlane.xlu0 %1909 }
0x11bd   :  { %3116 = vrcp.f32 %v1910_v39  ;;  %v2741_v39 = vld [vmem:[%s3729_s12 + $0x50] sm:$0xff] }
0x11c0   :  { %v1913_v3 = vpop.xlane.xlu0 %1912 }
0x11c1   :  { %3118 = vrcp.f32 %v1913_v3  ;;  %v2740_v3 = vld [vmem:[%s3729_s12 + $0x48] sm:$0xff] }
0x11c4   :  { %v1919_v4 = vpop.permute.xlu0 %1918 }
0x11c5   :  { %2991 = vmatpush3.msra.mxu0 %v1919_v4  ;;  %v2739_v4 = vld [vmem:[%s3729_s12 + $0x40] sm:$0xff] }
0x11c6   :  { %3000 = vmatprep.subr.mxu0 %v2722_v9 }
0x11ca   :  { %v3117_v5 = vpop.eup %3116 }
0x11cb   :  { %v1916_v6 = vmul.f32 %v3117_v5, %v3113_v63  ;;  %v2745_v63 = vld [vmem:[%s3729_s12 + $0x70] sm:$0xff]  ;;  %v2736_v5 = vld [vmem:[%s3730_s11 + $0x1] ss:$0 sm:$0xff] }
0x11cd   :  { %2993 = vmatmul.mubr.msk.f32.vlgmr.msra.gmra.mxu0 %vm400_vm3, %v1916_v6 }
0x11ce   :  { %v3119_v7 = vpop.eup %3118  ;;  %3001 = vmatpush3.msra.mxu0 %v2722_v9 }
0x11cf   :  { %v1917_v8 = vmul.f32 %v3119_v7, %v3115_v61  ;;  %3002 = vmatprep.subr.mxu0 %v2721_v2  ;;  %v2743_v61 = vld [vmem:[%s3729_s12 + $0x60] sm:$0xff] }
0x11d0   :  { %3003 = vmatpush3.msra.mxu0 %v2721_v2 }
0x11d1   :  { %2998 = vmatmul.mubr.msk.f32.vlgmr.msra.gmra.mxu1 %vm400_vm3, %v1917_v8  ;;  %3004 = vmatprep.subr.mxu0 %v2720_v10 }
0x11d2   :  { %3005 = vmatpush3.msra.mxu0 %v2720_v10 }
0x11d3   :  { %3006 = vmatprep.subr.mxu0 %v2719_v11 }
0x11d4   :  { %3007 = vmatpush3.msra.mxu0 %v2719_v11 }
0x11d5   :  { %3022 = vmatprep.subr.mxu0 %v2746_v59 }
0x128d   :  { %v1990_v12 = vpop.f32.mrf.mxu0 }
0x128e   :  { %2072 = vrot.lane.b32.xlu1 %v1990_v12, %s3146_s29 }
0x128f   :  { %v2994_v13 = vpop.f32.mrf.mxu0 }
0x1291   :  { %v2066_v14 = vpop.f32.mrf.mxu1 }
0x1292   :  { %2074 = vrot.lane.b32.xlu1 %v2066_v14, %s3146_s29 }
0x1293   :  { %v2999_v15 = vpop.f32.mrf.mxu1 }
0x1300   :  { %v2073_v16 = vpop.permute.xlu1 %2072 }
0x1301   :  { %v2078_v17 = vsel %vm234_vm2, %v3560_v40, %v2073_v16 }
0x1302   :  { %3008 = vmatprep.mubr.msk.f32.mxu0 %vm69_vm0, %v2078_v17 }
0x1304   :  { %v2075_v18 = vpop.permute.xlu1 %2074 }
0x1305   :  { %v2079_v19 = vsel %vm234_vm2, %v3562_v42, %v2075_v18  ;;  %v2732_v42 = vld [vmem:[%s3726_s10 + $0x28] sm:$0xff] }
0x1306   :  { %3009 = vmatmul.mubr.msk.f32.vlgmr.msra.gmra.mxu0 %vm69_vm0, %v2079_v19 }
0x1307   :  { %3023 = vmatpush3.msra.mxu0 %v2746_v59 }
0x1308   :  { %3024 = vmatprep.subr.mxu0 %v2745_v63 }
0x1309   :  { %3025 = vmatpush3.msra.mxu0 %v2745_v63  ;;  %v2754_v63 = vld [vmem:[%s3733_s15 + $0x1] ss:$0 sm:$0xff] }
0x130a   :  { %3026 = vmatprep.subr.mxu0 %v2744_v0 }
0x130b   :  { %3027 = vmatpush3.msra.mxu0 %v2744_v0 }
0x130c   :  { %3028 = vmatprep.subr.mxu0 %v2743_v61 }
0x130d   :  { %3029 = vmatpush3.msra.mxu0 %v2743_v61 }
0x130e   :  { %3030 = vmatprep.subr.mxu0 %v2742_v1 }
0x130f   :  { %3031 = vmatpush3.msra.mxu0 %v2742_v1 }
0x1310   :  { %3032 = vmatprep.subr.mxu0 %v2741_v39 }
0x1311   :  { %3033 = vmatpush3.msra.mxu0 %v2741_v39 }
0x1312   :  { %3034 = vmatprep.subr.mxu0 %v2740_v3 }
0x1313   :  { %3035 = vmatpush3.msra.mxu0 %v2740_v3 }
0x1314   :  { %3036 = vmatprep.subr.mxu0 %v2739_v4 }
0x1315   :  { %3037 = vmatpush3.msra.mxu0 %v2739_v4 }
0x13c6   :  { %v3010_v21 = vpop.f32.mrf.mxu0 }
0x13c7   :  { %v2171_v22 = vadd.f32 %v3010_v21, %v2724_v20 }
0x13c8   :  { %v2165_v23 = vpop.f32.mrf.mxu0 }
0x13c9   :  { %v2166_v24 = vadd.f32 %v2724_v20, %v2165_v23  ;;  %v2175_v25 = vadd.f32 %v2171_v22, %v3493_v62 }
0x13cb   :  { %v2183_v26 = vsel %vm69_vm0, %v2175_v25, 0.0  ;;  %v2174_v27 = vadd.f32 %v2166_v24, %v3491_v60  ;;  %v2734_v60 = vld [vmem:[%s3726_s10 + $0x38] sm:$0xff] }
0x13cc   :  { %2184 = vadd.xlane.f32.xlu1 %v2183_v26  ;;  %3011 = vmatprep.subr.mxu1 %v2734_v60 }
0x13cd   :  { %v2180_v28 = vsel %vm69_vm0, %v2174_v27, 0.0  ;;  %3012 = vmatpush3.msra.mxu1 %v2734_v60 }
0x13ce   :  { %2181 = vadd.xlane.f32.xlu0 %v2180_v28  ;;  %3013 = vmatprep.subr.mxu1 %v2733_v41 }
0x13cf   :  { %3014 = vmatpush3.msra.mxu1 %v2733_v41 }
0x13d0   :  { %3015 = vmatprep.subr.mxu1 %v2732_v42 }
0x13d1   :  { %3016 = vmatpush3.msra.mxu1 %v2732_v42 }
0x13d2   :  { %3017 = vmatprep.subr.mxu1 %v2731_v43 }
0x13d3   :  { %3018 = vmatpush3.msra.mxu1 %v2731_v43 }
0x13d4   :  { %3041 = vmatprep.subr.mxu1 %v3138_v34 }
0x1455   :  { %v2185_v33 = vpop.xlane.xlu1 %2184 }
0x1456   :  { %v2187_v31 = vmul.f32 0.03125, %v2185_v33 }
0x1457   :  { %v2182_v29 = vpop.xlane.xlu0 %2181 }
0x1458   :  { %v2186_v30 = vmul.f32 0.03125, %v2182_v29  ;;  %v2189_v32 = vsub.f32 %v2175_v25, %v2187_v31 }
0x145a   :  { %v2188_v35 = vsub.f32 %v2174_v27, %v2186_v30  ;;  %v2191_v40 = vmul.f32 %v2189_v32, %v2189_v32  ;;  %v2748_v27 = vld [vmem:[%s3731_s13 + $0x1] ss:$0 sm:$0xff] }
0x145c   :  { %v2190_v36 = vmul.f32 %v2188_v35, %v2188_v35  ;;  %v2195_v62 = vsel %vm69_vm0, %v2191_v40, 0.0 }
0x145e   :  { %v2192_v38 = vsel %vm69_vm0, %v2190_v36, 0.0 }
0x145f   :  { %2193 = vadd.xlane.f32.xlu0 %v2192_v38 }
0x1463   :  { %2196 = vadd.xlane.f32.xlu0 %v2195_v62 }
0x14e8   :  { %v2194_v44 = vpop.xlane.xlu0 %2193 }
0x14e9   :  { %v2198_v45 = vmul.f32 0.03125, %v2194_v44 }
0x14eb   :  { %v2200_v46 = vadd.f32 1e-05, %v2198_v45 }
0x14ec   :  { %v2197_v47 = vpop.xlane.xlu0 %2196 }
0x14ed   :  { %3120 = vrsqrt.f32 %v2200_v46  ;;  %v2199_v48 = vmul.f32 0.03125, %v2197_v47  ;;  %v2488_v47 = vld [vmem:[%s3734_s16 + $0x18] sm:$0xff] }
0x14ef   :  { %v2201_v49 = vadd.f32 1e-05, %v2199_v48  ;;  %v2487_v48 = vld [vmem:[%s3734_s16 + $0x10] sm:$0xff] }
0x14f1   :  { %3122 = vrsqrt.f32 %v2201_v49  ;;  %v2486_v49 = vld [vmem:[%s3734_s16 + $0x8] sm:$0xff] }
0x14fa   :  { %v3121_v50 = vpop.eup %3120 }
0x14fb   :  { %v2204_v52 = vmul.f32 %v3121_v50, %v2188_v35  ;;  %v2485_v50 = vld [vmem:[%s3734_s16] sm:$0xff] }
0x14fd   :  { %v2212_v54 = vmul.f32 %v2729_v51, %v2204_v52 }
0x14fe   :  { %v3123_v56 = vpop.eup %3122 }
0x14ff   :  { %v2205_v37 = vmul.f32 %v3123_v56, %v2189_v32  ;;  %v3624_v57 = vadd.f32 %v2730_v53, %v2212_v54 }
0x1501   :  { %v2213_v55 = vmul.f32 %v2729_v51, %v2205_v37  ;;  %3019 = vmatprep.mubr.msk.f32.mxu1 %vm69_vm0, %v3624_v57 }
0x1503   :  { %v2221_v58 = vadd.f32 %v2730_v53, %v2213_v55  ;;  %v2753_v55 = vld [vmem:[%s3732_s14 + $0x1] ss:$0 sm:$0xff] }
0x1505   :  { %3020 = vmatmul.mubr.msk.f32.vlgmr.msra.gmra.mxu1 %vm69_vm0, %v2221_v58 }
0x1506   :  { %3049 = vmatprep.mubr.msk.f32.mxu1 %vm3139_vm1, %v3138_v34  ;;  %3042 = vmatpush3.msra.mxu1 %v2488_v47 }
0x1507   :  { %3043 = vmatprep.subr.mxu1 %v3138_v34 }
0x1508   :  { %3044 = vmatpush3.msra.mxu1 %v2487_v48 }
0x1509   :  { %3045 = vmatprep.subr.mxu1 %v3138_v34 }
0x150a   :  { %3046 = vmatpush3.msra.mxu1 %v2486_v49 }
0x150b   :  { %3047 = vmatprep.subr.mxu1 %v3138_v34 }
0x150c   :  { %3048 = vmatpush3.msra.mxu1 %v2485_v50 }
0x150d   :  { %3052 = vmatprep.subr.mxu1 %v3138_v34 }
0x15c5   :  { %v3021_v6 = vpop.f32.mrf.mxu1 }
0x15c6   :  { %v2313_v7 = vadd.f32 %v3021_v6, %v2736_v5  ;;  %v2573_v6 = vld [vmem:[%s3735_s18 + $0x18] sm:$0xff] }
0x15c7   :  { %v2307_v8 = vpop.f32.mrf.mxu1 }
0x15c8   :  { %v2319_v9 = vmul.f32 0.044715, %v2313_v7  ;;  %v2308_v2 = vadd.f32 %v2736_v5, %v2307_v8  ;;  %v2317_v24 = vmul.f32 0.5, %v2313_v7  ;;  %v2571_v8 = vld [vmem:[%s3735_s18 + $0x8] sm:$0xff] }
0x15ca   :  { %v2321_v10 = vmul.f32 %v2319_v9, %v2313_v7  ;;  %v2318_v11 = vmul.f32 0.044715, %v2308_v2  ;;  %v2316_v22 = vmul.f32 0.5, %v2308_v2  ;;  %v2570_v9 = vld [vmem:[%s3735_s18] sm:$0xff] }
0x15cc   :  { %v2323_v12 = vmul.f32 %v2321_v10, %v2313_v7  ;;  %v2320_v13 = vmul.f32 %v2318_v11, %v2308_v2 }
0x15ce   :  { %v2325_v14 = vadd.f32 %v2323_v12, %v2313_v7  ;;  %v2322_v15 = vmul.f32 %v2320_v13, %v2308_v2  ;;  %v2572_v7 = vld [vmem:[%s3735_s18 + $0x10] sm:$0xff] }
0x15d0   :  { %v2327_v16 = vmul.f32 0.7978846, %v2325_v14  ;;  %v2324_v17 = vadd.f32 %v2322_v15, %v2308_v2  ;;  %v2755_v2 = vld [vmem:[%s3736_s17] ss:$0 sm:$0xff] }
0x15d1   :  { %v2757_v14 = vld [vmem:[%s3737_s19] ss:$0 sm:$0xff] }
0x15d2   :  { %3124 = vtanh.f32 %v2327_v16  ;;  %v2326_v18 = vmul.f32 0.7978846, %v2324_v17 }
0x15d4   :  { %3126 = vtanh.f32 %v2326_v18 }
0x15df   :  { %v3125_v19 = vpop.eup %3124 }
0x15e0   :  { %v2331_v21 = vadd.f32 1.0, %v3125_v19 }
0x15e1   :  { %v3127_v20 = vpop.eup %3126 }
0x15e2   :  { %v2330_v23 = vadd.f32 1.0, %v3127_v20  ;;  %v2333_v26 = vmul.f32 %v2331_v21, %v2317_v24 }
0x15e4   :  { %v2332_v25 = vmul.f32 %v2330_v23, %v2316_v22 }
0x15e6   :  { %3038 = vmatprep.mubr.msk.f32.mxu0 %vm1182_vm4, %v2332_v25 }
0x15e7   :  { %3039 = vmatmul.mubr.msk.f32.vlgmr.msra.gmra.mxu0 %vm1182_vm4, %v2333_v26 }
0x16a7   :  { %v3040_v28 = vpop.f32.mrf.mxu0 }
0x16a8   :  { %v2429_v33 = vadd.f32 %v3040_v28, %v2748_v27 }
0x16a9   :  { %v2423_v31 = vpop.f32.mrf.mxu0 }
0x16aa   :  { %v2424_v29 = vadd.f32 %v2748_v27, %v2423_v31  ;;  %v2433_v30 = vadd.f32 %v2429_v33, %v2221_v58 }
0x16ac   :  { %v2441_v32 = vsel %vm69_vm0, %v2433_v30, 0.0  ;;  %v2432_v35 = vadd.f32 %v2424_v29, %v3624_v57 }
0x16ad   :  { %2442 = vadd.xlane.f32.xlu0 %v2441_v32 }
0x16ae   :  { %v2438_v36 = vsel %vm69_vm0, %v2432_v35, 0.0 }
0x16af   :  { %2439 = vadd.xlane.f32.xlu1 %v2438_v36 }
0x1736   :  { %v2443_v38 = vpop.xlane.xlu0 %2442 }
0x1737   :  { %v2445_v40 = vmul.f32 0.03125, %v2443_v38 }
0x1738   :  { %v2440_v62 = vpop.xlane.xlu1 %2439 }
0x1739   :  { %v2447_v60 = vsub.f32 %v2433_v30, %v2445_v40  ;;  %v2444_v41 = vmul.f32 0.03125, %v2440_v62 }
0x173b   :  { %v2446_v42 = vsub.f32 %v2432_v35, %v2444_v41  ;;  %v2449_v43 = vmul.f32 %v2447_v60, %v2447_v60 }
0x173d   :  { %v2453_v44 = vsel %vm69_vm0, %v2449_v43, 0.0  ;;  %v2448_v45 = vmul.f32 %v2446_v42, %v2446_v42 }
0x173e   :  { %2454 = vadd.xlane.f32.xlu0 %v2453_v44 }
0x173f   :  { %v2450_v46 = vsel %vm69_vm0, %v2448_v45, 0.0 }
0x1740   :  { %2451 = vadd.xlane.f32.xlu1 %v2450_v46 }
0x17c7   :  { %v2455_v51 = vpop.xlane.xlu0 %2454 }
0x17c8   :  { %v2457_v52 = vmul.f32 0.03125, %v2455_v51 }
0x17c9   :  { %v2452_v53 = vpop.xlane.xlu1 %2451 }
0x17ca   :  { %v2459_v54 = vadd.f32 1e-05, %v2457_v52  ;;  %v2456_v56 = vmul.f32 0.03125, %v2452_v53 }
0x17cc   :  { %3128 = vrsqrt.f32 %v2459_v54  ;;  %v2458_v37 = vadd.f32 1e-05, %v2456_v56 }
0x17ce   :  { %3130 = vrsqrt.f32 %v2458_v37 }
0x17d9   :  { %v3129_v57 = vpop.eup %3128 }
0x17da   :  { %v2463_v58 = vmul.f32 %v3129_v57, %v2447_v60 }
0x17db   :  { %v3131_v59 = vpop.eup %3130 }
0x17dc   :  { %v2462_v0 = vmul.f32 %v3131_v59, %v2446_v42  ;;  %v2471_v61 = vmul.f32 %v2753_v55, %v2463_v58 }
0x17de   :  { %v2470_v1 = vmul.f32 %v2753_v55, %v2462_v0  ;;  %v2479_v39 = vadd.f32 %v2754_v63, %v2471_v61 }
0x17e0   :  { %v2478_v3 = vadd.f32 %v2754_v63, %v2470_v1  ;;  %v2481_v4 = vrot.slane %v2479_v39, 7 }
0x17e2   :  { %v2484_v5 = vsel %vm2483_vm5, %v2478_v3, %v2481_v4 }
0x17e3   :  { %3050 = vmatmul.mubr.msk.f32.vlgmr.msra.gmra.mxu1 %vm69_vm0, %v2484_v5 }
0x17e4   :  { %3060 = vmatprep.mubr.msk.f32.mxu1 %vm3139_vm1, %v3138_v34  ;;  %3053 = vmatpush3.msra.mxu1 %v2573_v6 }
0x17e5   :  { %3054 = vmatprep.subr.mxu1 %v3138_v34 }
0x17e6   :  { %3055 = vmatpush3.msra.mxu1 %v2572_v7 }
0x17e7   :  { %3056 = vmatprep.subr.mxu1 %v3138_v34 }
0x17e8   :  { %3057 = vmatpush3.msra.mxu1 %v2571_v8 }
0x17e9   :  { %3058 = vmatprep.subr.mxu1 %v3138_v34 }
0x17ea   :  { %3059 = vmatpush3.msra.mxu1 %v2570_v9 }
0x18a3   :  { %v2565_v10 = vpop.f32.mrf.mxu1 }
0x18a4   :  { %v2566_v11 = vadd.f32 %v2755_v2, %v2565_v10 }
0x18a5   :  { %v3051_v12 = vpop.f32.mrf.mxu1 }
0x18a6   :  { %3132 = vtanh.f32 %v2566_v11 }
0x18b3   :  { %v3133_v13 = vpop.eup %3132 }
0x18b4   :  { %3061 = vmatmul.mubr.msk.f32.vlgmr.msra.gmra.mxu1 %vm69_vm0, %v3133_v13 }
0x1974   :  { %v2650_v15 = vpop.f32.mrf.mxu1 }
0x1975   :  { %v2651_v16 = vadd.f32 %v2757_v14, %v2650_v15 }
0x1976   :  { %v3062_v17 = vpop.f32.mrf.mxu1 }
0x1977   :  { %v2654_v34 = vand.u32 2147483647, %v2651_v16  ;;  %vm2658_vm6 = vcmp.ge.f32.partialorder %v2651_v16, 0.0 }
0x1979   :  { %v2655_v18 = vsub.f32 0.0, %v2654_v34 }
0x197b   :  { %v2656_v19 = vmul.f32 1.442695, %v2655_v18 }
0x197d   :  { %3134 = vpow2.f32 %v2656_v19 }
0x198a   :  { %v3135_v20 = vpop.eup %3134 }
0x198b   :  { %v2659_v21 = vadd.f32 1.0, %v3135_v20 }
0x198d   :  { %3136 = vrcp.f32 %v2659_v21 }
0x199a   :  { %v3137_v22 = vpop.eup %3136 }
0x199b   :  { %v2662_v23 = vmul.f32 %v3137_v22, %v3135_v20 }
0x199d   :  { %v2663_v24 = vsel %vm2658_vm6, %v3137_v22, %v2662_v23 }
0x199e   :  { %2664 = vst [vmem:[%s3738_s20] sm:$0x3] %v2663_v24 }

</bundles_post_ra>
